<compile_context>
chip_gen: v7x
topology: tpu7x:2x2x1
jax: 0.10.0
libtpu: 0.0.40
codegen_flags: <defaults>
</compile_context>

<pallas_src>
import functools
from types import SimpleNamespace

import jax
import jax.numpy as jnp
from jax.experimental import pallas as pl
from jax.experimental.pallas import tpu as pltpu

# bf16 operands for the big matmuls (f32 accumulation). jnp.float32 => full precision.
MATMUL_DTYPE = jnp.bfloat16


def _vmem_limit_bytes():
    """~3/4 of physical VMEM: ~96 MiB on v5e/v6e (128 MiB), ~48 MiB on v7x (64 MiB)."""
    try:
        info_fn = getattr(pltpu, "get_tpu_info", None)
        cap = getattr(info_fn(), "vmem_capacity_bytes", None) if info_fn else None
        if cap:
            return max(32 * 1024 * 1024, min(int(cap) * 3 // 4, 100 * 1024 * 1024))
    except Exception:
        pass
    return 48 * 1024 * 1024


VMEM_LIMIT = _vmem_limit_bytes()


def _mosaic(*sem):
    return pltpu.CompilerParams(dimension_semantics=sem, vmem_limit_bytes=VMEM_LIMIT)


def _pick_tile(dim, desired, align):
    """Largest multiple of `align` <= desired that divides dim; otherwise the full dim."""
    if dim <= desired:
        return dim
    t = desired - desired % align
    while t >= align:
        if dim % t == 0:
            return t
        t -= align
    return dim


# ----------------------------------------------------------------------------
# Pallas kernels
# ----------------------------------------------------------------------------
def _bmm_bias_act_kernel(act, has_resid, x_ref, w_ref, b_ref, *rest):
    """out = act(W @ x + b) (+ resid).  x:(1,K,tp) f32  W:(tn,K) bf16  b:(tn,1) f32."""
    if has_resid:
        r_ref, o_ref = rest
    else:
        (o_ref,) = rest
    w = w_ref[...]
    y = jnp.dot(w, x_ref[0].astype(w.dtype),
                preferred_element_type=jnp.float32) + b_ref[...]
    if act == "relu":
        y = jnp.maximum(y, 0.0)
    elif act == "gelu":
        # TODO(synk): PyTorch nn.GELU default is the exact erf form; tanh approximation
        # is used here for robust Mosaic lowering.
        y = jax.nn.gelu(y, approximate=True)
    if has_resid:
        y = y + r_ref[0]
    o_ref[0] = y


def batched_matmul_bias_act(x, w, b, act="none", resid=None, tile_n=256, tile_p=512):
    """x:(B,K,P) f32  w:(N,K)  b:(N,) -> (B,N,P) f32.   NCHW 1x1-conv workhorse.

    Grid = (N/tn, P/tp, B) with the batch innermost so each weight tile is fetched
    once per output-tile row (not once per batch element).
    """
    bsz, k, p = x.shape
    n = w.shape[0]

    # Large non-128-multiple lane dims: pad to 128 so we can tile (avoids huge
    # full-dim blocks / masked stores); padding is sliced off at the end.
    p_pad = 0
    if p % 128 != 0 and p > 512:
        p_pad = (-p) % 128
        x = jnp.pad(x, ((0, 0), (0, 0), (0, p_pad)))
        if resid is not None:
            resid = jnp.pad(resid, ((0, 0), (0, 0), (0, p_pad)))
    pp = p + p_pad

    tn = _pick_tile(n, tile_n, 8)
    tp = _pick_tile(pp, tile_p, 128)

    in_specs = [
        pl.BlockSpec((1, k, tp), lambda ni, pi, bi: (bi, 0, pi)),
        pl.BlockSpec((tn, k), lambda ni, pi, bi: (ni, 0)),
        pl.BlockSpec((tn, 1), lambda ni, pi, bi: (ni, 0)),
    ]
    args = [x, w, b.reshape(n, 1)]
    if resid is not None:
        in_specs.append(pl.BlockSpec((1, tn, tp), lambda ni, pi, bi: (bi, ni, pi)))
        args.append(resid)

    out = pl.pallas_call(
        functools.partial(_bmm_bias_act_kernel, act, resid is not None),
        out_shape=jax.ShapeDtypeStruct((bsz, n, pp), jnp.float32),
        grid=(n // tn, pp // tp, bsz),
        in_specs=in_specs,
        out_specs=pl.BlockSpec((1, tn, tp), lambda ni, pi, bi: (bi, ni, pi)),
        compiler_params=_mosaic("parallel", "parallel", "parallel"),
    )(*args)
    if p_pad:
        out = out[:, :, :p]
    return out


def _grouped_fc_kernel(x_ref, w_ref, cs_ref, ct_ref, gv_ref, bias_ref, o_ref):
    """Per-shareset FC with fused prebn1 input affine, BN bias and GP gate.

    x:(1,tb,hw_in) f32  w:(1,hw_in,to) bf16  cs/ct/gv:(1,tb,1) f32  bias:(S,) SMEM.
    out = ((cs*x + ct) @ W + bias[s]) * gv
    """
    s = pl.program_id(0)
    w = w_ref[0]
    x_bn = x_ref[0] * cs_ref[0] + ct_ref[0]
    y = jnp.dot(x_bn.astype(w.dtype), w, preferred_element_type=jnp.float32)
    o_ref[0] = (y + bias_ref[s]) * gv_ref[0]


def grouped_fc_bn(x, w_t, cs, ct, gv, bias, tile_o=512, tile_b=512):
    """x:(S,B,hw_in)  w_t:(S,hw_in,hw_out)  cs/ct/gv:(S,B,1)  bias:(S,) -> (S,B,hw_out)."""
    s, bsz, hw_in = x.shape
    hw_out = w_t.shape[2]
    tb = _pick_tile(bsz, tile_b, 8)
    to = _pick_tile(hw_out, tile_o, 128)
    return pl.pallas_call(
        _grouped_fc_kernel,
        out_shape=jax.ShapeDtypeStruct((s, bsz, hw_out), jnp.float32),
        grid=(s, hw_out // to, bsz // tb),
        in_specs=[
            pl.BlockSpec((1, tb, hw_in), lambda si, oi, bi: (si, bi, 0)),
            pl.BlockSpec((1, hw_in, to), lambda si, oi, bi: (si, 0, oi)),
            pl.BlockSpec((1, tb, 1), lambda si, oi, bi: (si, bi, 0)),
            pl.BlockSpec((1, tb, 1), lambda si, oi, bi: (si, bi, 0)),
            pl.BlockSpec((1, tb, 1), lambda si, oi, bi: (si, bi, 0)),
            pl.BlockSpec(memory_space=pltpu.MemorySpace.SMEM),
        ],
        out_specs=pl.BlockSpec((1, tb, to), lambda si, oi, bi: (si, bi, oi)),
        compiler_params=_mosaic("parallel", "parallel", "parallel"),
    )(x, w_t, cs, ct, gv, bias)


def _row_pool_kernel(inv_l, x_ref, o_ref):
    @pl.when(pl.program_id(1) == 0)
    def _():
        o_ref[...] = jnp.zeros_like(o_ref)

    o_ref[...] += jnp.sum(x_ref[...], axis=1, keepdims=True)

    @pl.when(pl.program_id(1) == pl.num_programs(1) - 1)
    def _():
        o_ref[...] = o_ref[...] * inv_l


def row_pool(x2d, tile_r=256, tile_l=2048):
    """Mean over the last axis: (R, L) -> (R, 1), accumulating over L tiles."""
    r, l = x2d.shape
    tr = _pick_tile(r, tile_r, 8)
    tl = _pick_tile(l, tile_l, 128)
    return pl.pallas_call(
        functools.partial(_row_pool_kernel, 1.0 / l),
        out_shape=jax.ShapeDtypeStruct((r, 1), jnp.float32),
        grid=(r // tr, l // tl),
        in_specs=[pl.BlockSpec((tr, tl), lambda i, j: (i, j))],
        out_specs=pl.BlockSpec((tr, 1), lambda i, j: (i, 0)),
        compiler_params=_mosaic("parallel", "arbitrary"),
    )(x2d)


def _gp_kernel(p_ref, w1_ref, b1_ref, w2_ref, b2_ref, o_ref):
    hid = jnp.dot(p_ref[...], w1_ref[...], preferred_element_type=jnp.float32) + b1_ref[...]
    hid = jnp.maximum(hid, 0.0)
    out = jnp.dot(hid, w2_ref[...], preferred_element_type=jnp.float32) + b2_ref[...]
    o_ref[...] = jax.nn.sigmoid(out)


def global_perceptron(pooled, w1, b1, w2, b2):
    n, c = pooled.shape
    return pl.pallas_call(
        _gp_kernel,
        out_shape=jax.ShapeDtypeStruct((n, c), jnp.float32),
    )(pooled, w1, b1.reshape(1, -1), w2, b2.reshape(1, -1))


def _linear_kernel(x_ref, w_ref, b_ref, o_ref):
    o_ref[...] = jnp.dot(x_ref[...], w_ref[...], preferred_element_type=jnp.float32) + b_ref[...]


def linear(x, w, b):
    m = x.shape[0]
    n = w.shape[1]
    return pl.pallas_call(
        _linear_kernel,
        out_shape=jax.ShapeDtypeStruct((m, n), jnp.float32),
    )(x, w, b.reshape(1, n))


# ----------------------------------------------------------------------------
# Plain-JAX glue (BN folding, locality injection, layout shuffles)
# ----------------------------------------------------------------------------
def bn_affine(bn, eps=1e-5):
    scale = bn["gamma"] / jnp.sqrt(bn["var"] + eps)
    shift = bn["beta"] - bn["mean"] * scale
    return scale, shift


def dw3x3_as_fc(kernel_s33, h, w):
    """Depthwise 3x3 conv (pad=1) per shareset as a dense (S, hw_out, hw_in) matrix."""
    s = kernel_s33.shape[0]
    oi = jnp.arange(h)[:, None]
    ii = jnp.arange(h)[None, :]
    di = ii - oi + 1                      # kernel row index for (out_row, in_row)
    vi = (di >= 0) & (di <= 2)
    oj = jnp.arange(w)[:, None]
    ij = jnp.arange(w)[None, :]
    dj = ij - oj + 1
    vj = (dj >= 0) & (dj <= 2)
    dic = jnp.clip(di, 0, 2)[:, :, None, None]
    djc = jnp.clip(dj, 0, 2)[None, None, :, :]
    band = kernel_s33[:, dic, djc]                                  # (S, h, h, w, w)
    mask = vi[:, :, None, None] & vj[None, None, :, :]
    band = jnp.where(mask, band, 0.0)
    # (S, oi, ii, oj, ij) -> (S, oi*w+oj, ii*w+ij)
    return band.transpose(0, 1, 3, 2, 4).reshape(s, h * w, h * w)


def conv_bn_relu_patch(x, w4d, bn, patch):
    """Conv2dBNActivation with kernel==stride==patch, padding 0, bias=False, ReLU."""
    n, c, hh, ww = x.shape
    ph, pw = patch
    cout = w4d.shape[0]
    ho, wo = hh // ph, ww // pw
    patches = (x.reshape(n, c, ho, ph, wo, pw)
                 .transpose(0, 1, 3, 5, 2, 4)
                 .reshape(n, c * ph * pw, ho * wo))
    scale, shift = bn_affine(bn)                                    # fold BN into conv
    w2d = (w4d.reshape(cout, c * ph * pw) * scale[:, None]).astype(MATMUL_DTYPE)
    out = batched_matmul_bias_act(patches, w2d, shift, act="relu")  # (N, Cout, Ho*Wo)
    return out.reshape(n, cout, ho, wo)


def repmlp_unit(x, p, h, w, num_sharesets):
    n, c, hh, ww = x.shape
    area = hh * ww
    s_ = num_sharesets
    hp, wp = hh // h, ww // w
    co = c // s_
    hw = h * w
    bsz = n * hp * wp * co

    rp = p["repmlp"]
    s1, t1 = bn_affine(p["prebn1"])

    # --- Global Perceptron on prebn1(x): pool raw x, fold the BN affine into fc1 ---
    pooled = row_pool(x.reshape(n * c, area)).reshape(n, c)
    gp_w1 = s1[:, None] * rp["gp_w1"]
    gp_b1 = rp["gp_b1"] + t1 @ rp["gp_w1"]
    gvec = global_perceptron(pooled, gp_w1, gp_b1, rp["gp_w2"], rp["gp_b2"])  # (N, C)

    # --- partition raw x to (S, B, hw); B ordered (n, hp, wp, c//S); shareset = c % S ---
    parts = (x.reshape(n, co, s_, hp, h, wp, w)
               .transpose(2, 0, 3, 5, 1, 4, 6)
               .reshape(s_, bsz, hw))

    def to_sb(vec_c):  # (C,) indexed by c = co*S + s  ->  (S, B, 1) in partition order
        v = vec_c.reshape(co, s_).T                                  # (S, co)
        v = jnp.broadcast_to(v[:, None, None, None, :], (s_, n, hp, wp, co))
        return v.reshape(s_, bsz, 1)

    cs = to_sb(s1)                                                   # prebn1 scale
    ct = to_sb(t1)                                                   # prebn1 shift
    gv = (jnp.broadcast_to(
            gvec.reshape(n, co, s_).transpose(2, 0, 1)[:, :, None, None, :],
            (s_, n, hp, wp, co)).reshape(s_, bsz, 1))                # GP gate

    # --- Channel + Local Perceptron: locality injection.  The depthwise-3x3 conv_bn
    #     branch is a linear map on the same partitions, so fold it exactly into the
    #     fc3 matrix (with fc3_bn / repconv_bn scales pre-applied). ---
    s3, t3 = bn_affine(rp["fc3_bn"])
    sc, tc = bn_affine(rp["repconv_bn"])
    band = dw3x3_as_fc(rp["repconv_w"], h, w)                        # (S, hw_out, hw_in)
    w_comb = s3[:, None, None] * rp["fc3_w"] + sc[:, None, None] * band
    w_t = w_comb.transpose(0, 2, 1).astype(MATMUL_DTYPE)             # (S, hw_in, hw_out)
    rep_out = grouped_fc_bn(parts, w_t, cs, ct, gv, t3 + tc)         # (S, B, hw)

    # --- un-partition + unit residual: y = x + gate * repmlp(prebn1(x)).
    #     The add is left to XLA so it fuses into the transpose (single pass). ---
    rep_nchw = (rep_out.reshape(s_, n, hp, wp, co, h, w)
                        .transpose(1, 4, 0, 2, 5, 3, 6)
                        .reshape(n, c, area))
    y_chw = x.reshape(n, c, area) + rep_nchw

    # --- FFN: prebn2 + conv_bn(GELU) + conv_bn, all BN folded, residual fused ---
    f = p["ffn"]
    sp2, tp2 = bn_affine(p["prebn2"])
    sf1, tf1 = bn_affine(f["bn1"])
    sf2, tf2 = bn_affine(f["bn2"])
    w1 = (f["w1"] * sf1[:, None] * sp2[None, :]).astype(MATMUL_DTYPE)
    b1 = sf1 * (f["w1"] @ tp2) + tf1
    w2 = (f["w2"] * sf2[:, None]).astype(MATMUL_DTYPE)
    b2 = tf2

    hid = batched_matmul_bias_act(y_chw, w1, b1, act="gelu")
    z = batched_matmul_bias_act(hid, w2, b2, act="none", resid=y_chw)  # z = y + ffn(bn2(y))
    return z.reshape(n, c, hh, ww)


def head_forward(x, params):
    n, c, hh, ww = x.shape
    pooled = row_pool(x.reshape(n * c, hh * ww)).reshape(n, c)
    # head_norm folded into the head linear (channel affine commutes with the mean pool)
    scale, shift = bn_affine(params["head_norm"])
    w = scale[:, None] * params["head_w"].T
    b = params["head_b"] + params["head_w"] @ shift
    return linear(pooled, w, b)


def repmlpnet_forward(x, params, cfg):
    x = conv_bn_relu_patch(x, params["conv_embedding"]["w"],
                           params["conv_embedding"]["bn"], cfg.patch_size)
    nstages = len(cfg.num_blocks)
    for si in range(nstages):
        for blk in params["stages"][si]:
            x = repmlp_unit(x, blk, cfg.hs[si], cfg.ws[si], cfg.sharesets_nums[si])
        if si < nstages - 1:
            x = conv_bn_relu_patch(x, params["embeds"][si]["w"],
                                   params["embeds"][si]["bn"], (2, 2))
    return head_forward(x, params)


# ----------------------------------------------------------------------------
# Deterministic synthetic parameter initialization
# ----------------------------------------------------------------------------
class ParamGen:
    def __init__(self, key):
        self._key = key

    def _next(self):
        self._key, sub = jax.random.split(self._key)
        return sub

    def normal(self, shape, scale=0.1):
        return scale * jax.random.normal(self._next(), shape, jnp.float32)

    def pos(self, shape):
        return jax.random.uniform(self._next(), shape, jnp.float32, 0.5, 1.5)


def make_bn(pg, c):
    return {"gamma": pg.pos((c,)), "beta": pg.normal((c,)),
            "mean": pg.normal((c,)), "var": pg.pos((c,))}


def init_params(key, cfg):
    pg = ParamGen(key)
    params = {"conv_embedding": {
        "w": pg.normal((cfg.channels[0], cfg.in_channels,
                        cfg.patch_size[0], cfg.patch_size[1])),
        "bn": make_bn(pg, cfg.channels[0])}}
    stages, embeds = [], []
    nstages = len(cfg.num_blocks)
    for si in range(nstages):
        c = cfg.channels[si]
        s_ = cfg.sharesets_nums[si]
        hw = cfg.hs[si] * cfg.ws[si]
        cint = c // cfg.globalperceptron_reduce
        blocks = []
        for _ in range(cfg.num_blocks[si]):
            blocks.append({
                "prebn1": make_bn(pg, c),
                "prebn2": make_bn(pg, c),
                "repmlp": {
                    # GP 1x1-conv weights stored matmul-ready: (C,Cint),(Cint,C)
                    "gp_w1": pg.normal((c, cint), 0.2),
                    "gp_b1": pg.normal((cint,)),
                    "gp_w2": pg.normal((cint, c), 0.2),
                    "gp_b2": pg.normal((c,)),
                    # fc3: grouped 1x1 conv weight (S, hw_out, hw_in), no bias
                    "fc3_w": pg.normal((s_, hw, hw), 0.05),
                    "fc3_bn": make_bn(pg, s_),
                    # repconv3: depthwise 3x3 weight (S,3,3), no bias
                    "repconv_w": pg.normal((s_, 3, 3), 0.2),
                    "repconv_bn": make_bn(pg, s_),
                },
                "ffn": {
                    "w1": pg.normal((cfg.ffn_expand * c, c)),
                    "bn1": make_bn(pg, cfg.ffn_expand * c),
                    "w2": pg.normal((c, cfg.ffn_expand * c)),
                    "bn2": make_bn(pg, c),
                },
            })
        stages.append(blocks)
        if si < nstages - 1:
            embeds.append({"w": pg.normal((cfg.channels[si + 1], c, 2, 2)),
                           "bn": make_bn(pg, cfg.channels[si + 1])})
    params["stages"] = stages
    params["embeds"] = embeds
    params["head_norm"] = make_bn(pg, cfg.channels[-1])
    params["head_w"] = pg.normal((cfg.num_class, cfg.channels[-1]))
    params["head_b"] = pg.normal((cfg.num_class,))
    return params


# ----------------------------------------------------------------------------
if __name__ == "__main__":
    # Small RepMLPNet config (same structure as the PyTorch defaults, scaled down).
    cfg = SimpleNamespace(
        in_channels=3, num_class=10, patch_size=(2, 2),
        num_blocks=(1, 1), channels=(8, 16), hs=(8, 4), ws=(8, 4),
        sharesets_nums=(2, 4), reparam_conv_k=(3,),
        globalperceptron_reduce=4, ffn_expand=4)

    key = jax.random.PRNGKey(0)
    kparam, kx = jax.random.split(key)
    params = init_params(kparam, cfg)
    x = jax.random.normal(kx, (2, cfg.in_channels, 16, 16), jnp.float32)  # NCHW

    fwd = jax.jit(lambda inp, prm: repmlpnet_forward(inp, prm, cfg))
    out = jax.block_until_ready(fwd(x, params))
    assert out.shape == (2, cfg.num_class)
    assert bool(jnp.all(jnp.isfinite(out)))
    print("KERNEL_OK")
</pallas_src>

<mosaic_0001>
module attributes {stable_mosaic.version = 11 : i64} {
  func.func @_bmm_bias_act_kernel(%arg0: i32, %arg1: i32, %arg2: i32, %arg3: memref<1x12x64xf32, #tpu.memory_space<vmem>>, %arg4: memref<8x12xbf16, #tpu.memory_space<vmem>>, %arg5: memref<8x1xf32, #tpu.memory_space<vmem>>, %arg6: memref<1x8x64xf32, #tpu.memory_space<vmem>>) attributes {dimension_semantics = [#tpu.dimension_semantics<parallel>, #tpu.dimension_semantics<parallel>, #tpu.dimension_semantics<parallel>], iteration_bounds = array<i64: 1, 1, 2>, scalar_prefetch = 0 : i64, scratch_operands = 0 : i64, tpu.core_type = #tpu.core_type<tc>, window_params = [{transform_indices = @transform_0, window_bounds = array<i64: 1, 12, 64>}, {transform_indices = @transform_1, window_bounds = array<i64: 8, 12>}, {transform_indices = @transform_2, window_bounds = array<i64: 8, 1>}, {transform_indices = @transform_3, window_bounds = array<i64: 1, 8, 64>}]} {
    %c0 = arith.constant 0 : index
    %c0_0 = arith.constant 0 : index
    %0 = vector.load %arg4[%c0, %c0_0] : memref<8x12xbf16, #tpu.memory_space<vmem>>, vector<8x12xbf16>
    %c0_1 = arith.constant 0 : index
    %c0_2 = arith.constant 0 : index
    %c0_3 = arith.constant 0 : index
    %1 = vector.load %arg3[%c0_1, %c0_2, %c0_3] : memref<1x12x64xf32, #tpu.memory_space<vmem>>, vector<1x12x64xf32>
    %2 = vector.shape_cast %1 : vector<1x12x64xf32> to vector<12x64xf32>
    %3 = arith.truncf %2 : vector<12x64xf32> to vector<12x64xbf16>
    %cst = arith.constant dense<0.000000e+00> : vector<8x64xf32>
    %4 = tpu.matmul %0, %3, %cst {dimension_numbers = #tpu.dot_dimension_numbers<[1], [0], [0], [1], [0, 0, 1, 1], [], []>} : vector<8x12xbf16>, vector<12x64xbf16>, vector<8x64xf32> -> vector<8x64xf32>
    %c0_4 = arith.constant 0 : index
    %c0_5 = arith.constant 0 : index
    %5 = vector.load %arg5[%c0_4, %c0_5] : memref<8x1xf32, #tpu.memory_space<vmem>>, vector<8x1xf32>
    %6 = vector.broadcast %5 : vector<8x1xf32> to vector<8x64xf32>
    %7 = arith.addf %4, %6 : vector<8x64xf32>
    %cst_6 = arith.constant 0.000000e+00 : f32
    %8 = vector.broadcast %cst_6 : f32 to vector<8x64xf32>
    %9 = arith.maximumf %7, %8 : vector<8x64xf32>
    %c0_7 = arith.constant 0 : index
    %c0_8 = arith.constant 0 : index
    %c0_9 = arith.constant 0 : index
    %10 = vector.load %arg6[%c0_7, %c0_8, %c0_9] : memref<1x8x64xf32, #tpu.memory_space<vmem>>, vector<1x8x64xf32>
    %11 = vector.shape_cast %10 : vector<1x8x64xf32> to vector<8x64xf32>
    %12 = vector.shape_cast %9 : vector<8x64xf32> to vector<1x8x64xf32>
    tpu.vector_store %arg6[%c0_7, %c0_8, %c0_9], %12 {strides = array<i32>} : memref<1x8x64xf32, #tpu.memory_space<vmem>>, vector<1x8x64xf32>,
    return
  }
  func.func @transform_0(%arg0: i32, %arg1: i32, %arg2: i32) -> (i32, i32, i32) {
    %c0_i32 = arith.constant 0 : i32
    %c0_i32_0 = arith.constant 0 : i32
    return %arg2, %c0_i32, %arg1 : i32, i32, i32
  }
  func.func @transform_1(%arg0: i32, %arg1: i32, %arg2: i32) -> (i32, i32) {
    %c0_i32 = arith.constant 0 : i32
    %c0_i32_0 = arith.constant 0 : i32
    return %arg0, %c0_i32 : i32, i32
  }
  func.func @transform_2(%arg0: i32, %arg1: i32, %arg2: i32) -> (i32, i32) {
    %c0_i32 = arith.constant 0 : i32
    %c0_i32_0 = arith.constant 0 : i32
    return %arg0, %c0_i32 : i32, i32
  }
  func.func @transform_3(%arg0: i32, %arg1: i32, %arg2: i32) -> (i32, i32, i32) {
    %c0_i32 = arith.constant 0 : i32
    return %arg2, %arg0, %arg1 : i32, i32, i32
  }
}

module attributes {stable_mosaic.version = 11 : i64} {
  func.func @_row_pool_kernel(%arg0: i32, %arg1: i32, %arg2: memref<16x64xf32, #tpu.memory_space<vmem>>, %arg3: memref<16x1xf32, #tpu.memory_space<vmem>>) attributes {dimension_semantics = [#tpu.dimension_semantics<parallel>, #tpu.dimension_semantics<arbitrary>], iteration_bounds = array<i64: 1, 1>, scalar_prefetch = 0 : i64, scratch_operands = 0 : i64, tpu.core_type = #tpu.core_type<tc>, window_params = [{transform_indices = @transform_0, window_bounds = array<i64: 16, 64>}, {transform_indices = @transform_1, window_bounds = array<i64: 16, 1>}]} {
    %c0_i32 = arith.constant 0 : i32
    %0 = arith.cmpi eq, %arg1, %c0_i32 : i32
    %1 = arith.extui %0 : i1 to i32
    %c0_i32_0 = arith.constant 0 : i32
    %2 = arith.cmpi ne, %1, %c0_i32_0 : i32
    scf.if %2 {
      %cst_8 = arith.constant 0.000000e+00 : f32
      %12 = vector.broadcast %cst_8 : f32 to vector<16x1xf32>
      %c0_9 = arith.constant 0 : index
      %c0_10 = arith.constant 0 : index
      %13 = vector.load %arg3[%c0_9, %c0_10] : memref<16x1xf32, #tpu.memory_space<vmem>>, vector<16x1xf32>
      tpu.vector_store %arg3[%c0_9, %c0_10], %12 {strides = array<i32>} : memref<16x1xf32, #tpu.memory_space<vmem>>, vector<16x1xf32>,
    } else {
    }
    %c0 = arith.constant 0 : index
    %c0_1 = arith.constant 0 : index
    %3 = vector.load %arg3[%c0, %c0_1] : memref<16x1xf32, #tpu.memory_space<vmem>>, vector<16x1xf32>
    %c0_2 = arith.constant 0 : index
    %c0_3 = arith.constant 0 : index
    %4 = vector.load %arg2[%c0_2, %c0_3] : memref<16x64xf32, #tpu.memory_space<vmem>>, vector<16x64xf32>
    %cst = arith.constant dense<0.000000e+00> : vector<16xf32>
    %5 = vector.multi_reduction <add>, %4, %cst [1] : vector<16x64xf32> to vector<16xf32>
    %6 = vector.shape_cast %5 : vector<16xf32> to vector<16x1xf32>
    %7 = arith.addf %3, %6 : vector<16x1xf32>
    %c0_4 = arith.constant 0 : index
    %c0_5 = arith.constant 0 : index
    %8 = vector.load %arg3[%c0_4, %c0_5] : memref<16x1xf32, #tpu.memory_space<vmem>>, vector<16x1xf32>
    tpu.vector_store %arg3[%c0_4, %c0_5], %7 {strides = array<i32>} : memref<16x1xf32, #tpu.memory_space<vmem>>, vector<16x1xf32>,
    %c0_i32_6 = arith.constant 0 : i32
    %9 = arith.cmpi eq, %arg1, %c0_i32_6 : i32
    %10 = arith.extui %9 : i1 to i32
    %c0_i32_7 = arith.constant 0 : i32
    %11 = arith.cmpi ne, %10, %c0_i32_7 : i32
    scf.if %11 {
      %c0_8 = arith.constant 0 : index
      %c0_9 = arith.constant 0 : index
      %12 = vector.load %arg3[%c0_8, %c0_9] : memref<16x1xf32, #tpu.memory_space<vmem>>, vector<16x1xf32>
      %cst_10 = arith.constant 1.562500e-02 : f32
      %13 = vector.broadcast %cst_10 : f32 to vector<16x1xf32>
      %14 = arith.mulf %12, %13 : vector<16x1xf32>
      %c0_11 = arith.constant 0 : index
      %c0_12 = arith.constant 0 : index
      %15 = vector.load %arg3[%c0_11, %c0_12] : memref<16x1xf32, #tpu.memory_space<vmem>>, vector<16x1xf32>
      tpu.vector_store %arg3[%c0_11, %c0_12], %14 {strides = array<i32>} : memref<16x1xf32, #tpu.memory_space<vmem>>, vector<16x1xf32>,
    } else {
    }
    return
  }
  func.func @transform_0(%arg0: i32, %arg1: i32) -> (i32, i32) {
    %c0_i32 = arith.constant 0 : i32
    return %arg0, %arg1 : i32, i32
  }
  func.func @transform_1(%arg0: i32, %arg1: i32) -> (i32, i32) {
    %c0_i32 = arith.constant 0 : i32
    %c0_i32_0 = arith.constant 0 : i32
    return %arg0, %c0_i32 : i32, i32
  }
}

module attributes {stable_mosaic.version = 11 : i64} {
  func.func @_gp_kernel(%arg0: memref<2x8xf32, #tpu.memory_space<vmem>>, %arg1: memref<8x2xf32, #tpu.memory_space<vmem>>, %arg2: memref<1x2xf32, #tpu.memory_space<vmem>>, %arg3: memref<2x8xf32, #tpu.memory_space<vmem>>, %arg4: memref<1x8xf32, #tpu.memory_space<vmem>>, %arg5: memref<2x8xf32, #tpu.memory_space<vmem>>) attributes {dimension_semantics = [], scalar_prefetch = 0 : i64, scratch_operands = 0 : i64, tpu.core_type = #tpu.core_type<tc>} {
    %c0 = arith.constant 0 : index
    %c0_0 = arith.constant 0 : index
    %0 = vector.load %arg0[%c0, %c0_0] : memref<2x8xf32, #tpu.memory_space<vmem>>, vector<2x8xf32>
    %c0_1 = arith.constant 0 : index
    %c0_2 = arith.constant 0 : index
    %1 = vector.load %arg1[%c0_1, %c0_2] : memref<8x2xf32, #tpu.memory_space<vmem>>, vector<8x2xf32>
    %cst = arith.constant dense<0.000000e+00> : vector<2x2xf32>
    %2 = tpu.matmul %0, %1, %cst {dimension_numbers = #tpu.dot_dimension_numbers<[1], [0], [0], [1], [0, 0, 1, 1], [], []>} : vector<2x8xf32>, vector<8x2xf32>, vector<2x2xf32> -> vector<2x2xf32>
    %c0_3 = arith.constant 0 : index
    %c0_4 = arith.constant 0 : index
    %3 = vector.load %arg2[%c0_3, %c0_4] : memref<1x2xf32, #tpu.memory_space<vmem>>, vector<1x2xf32>
    %4 = vector.broadcast %3 : vector<1x2xf32> to vector<2x2xf32>
    %5 = arith.addf %2, %4 : vector<2x2xf32>
    %cst_5 = arith.constant 0.000000e+00 : f32
    %6 = vector.broadcast %cst_5 : f32 to vector<2x2xf32>
    %7 = arith.maximumf %5, %6 : vector<2x2xf32>
    %c0_6 = arith.constant 0 : index
    %c0_7 = arith.constant 0 : index
    %8 = vector.load %arg3[%c0_6, %c0_7] : memref<2x8xf32, #tpu.memory_space<vmem>>, vector<2x8xf32>
    %cst_8 = arith.constant dense<0.000000e+00> : vector<2x8xf32>
    %9 = tpu.matmul %7, %8, %cst_8 {dimension_numbers = #tpu.dot_dimension_numbers<[1], [0], [0], [1], [0, 0, 1, 1], [], []>} : vector<2x2xf32>, vector<2x8xf32>, vector<2x8xf32> -> vector<2x8xf32>
    %c0_9 = arith.constant 0 : index
    %c0_10 = arith.constant 0 : index
    %10 = vector.load %arg4[%c0_9, %c0_10] : memref<1x8xf32, #tpu.memory_space<vmem>>, vector<1x8xf32>
    %11 = vector.broadcast %10 : vector<1x8xf32> to vector<2x8xf32>
    %12 = arith.addf %9, %11 : vector<2x8xf32>
    %13 = arith.negf %12 : vector<2x8xf32>
    %14 = math.exp %13 : vector<2x8xf32>
    %cst_11 = arith.constant 1.000000e+00 : f32
    %15 = vector.broadcast %cst_11 : f32 to vector<2x8xf32>
    %16 = arith.addf %15, %14 : vector<2x8xf32>
    %17 = arith.divf %15, %16 : vector<2x8xf32>
    %c0_12 = arith.constant 0 : index
    %c0_13 = arith.constant 0 : index
    %18 = vector.load %arg5[%c0_12, %c0_13] : memref<2x8xf32, #tpu.memory_space<vmem>>, vector<2x8xf32>
    tpu.vector_store %arg5[%c0_12, %c0_13], %17 {strides = array<i32>} : memref<2x8xf32, #tpu.memory_space<vmem>>, vector<2x8xf32>,
    return
  }
}

module attributes {stable_mosaic.version = 11 : i64} {
  func.func @_grouped_fc_kernel(%arg0: i32, %arg1: i32, %arg2: i32, %arg3: memref<1x8x64xf32, #tpu.memory_space<vmem>>, %arg4: memref<1x64x64xbf16, #tpu.memory_space<vmem>>, %arg5: memref<1x8x1xf32, #tpu.memory_space<vmem>>, %arg6: memref<1x8x1xf32, #tpu.memory_space<vmem>>, %arg7: memref<1x8x1xf32, #tpu.memory_space<vmem>>, %arg8: memref<2xf32, #tpu.memory_space<smem>>, %arg9: memref<1x8x64xf32, #tpu.memory_space<vmem>>) attributes {dimension_semantics = [#tpu.dimension_semantics<parallel>, #tpu.dimension_semantics<parallel>, #tpu.dimension_semantics<parallel>], iteration_bounds = array<i64: 2, 1, 1>, scalar_prefetch = 0 : i64, scratch_operands = 0 : i64, tpu.core_type = #tpu.core_type<tc>, window_params = [{transform_indices = @transform_0, window_bounds = array<i64: 1, 8, 64>}, {transform_indices = @transform_1, window_bounds = array<i64: 1, 64, 64>}, {transform_indices = @transform_2, window_bounds = array<i64: 1, 8, 1>}, {transform_indices = @transform_3, window_bounds = array<i64: 1, 8, 1>}, {transform_indices = @transform_4, window_bounds = array<i64: 1, 8, 1>}, {transform_indices = @transform_5, window_bounds = array<i64: 2>}, {transform_indices = @transform_6, window_bounds = array<i64: 1, 8, 64>}]} {
    %c0 = arith.constant 0 : index
    %c0_0 = arith.constant 0 : index
    %c0_1 = arith.constant 0 : index
    %0 = vector.load %arg4[%c0, %c0_0, %c0_1] : memref<1x64x64xbf16, #tpu.memory_space<vmem>>, vector<1x64x64xbf16>
    %1 = vector.shape_cast %0 : vector<1x64x64xbf16> to vector<64x64xbf16>
    %c0_2 = arith.constant 0 : index
    %c0_3 = arith.constant 0 : index
    %c0_4 = arith.constant 0 : index
    %2 = vector.load %arg3[%c0_2, %c0_3, %c0_4] : memref<1x8x64xf32, #tpu.memory_space<vmem>>, vector<1x8x64xf32>
    %3 = vector.shape_cast %2 : vector<1x8x64xf32> to vector<8x64xf32>
    %c0_5 = arith.constant 0 : index
    %c0_6 = arith.constant 0 : index
    %c0_7 = arith.constant 0 : index
    %4 = vector.load %arg5[%c0_5, %c0_6, %c0_7] : memref<1x8x1xf32, #tpu.memory_space<vmem>>, vector<1x8x1xf32>
    %5 = vector.shape_cast %4 : vector<1x8x1xf32> to vector<8x1xf32>
    %6 = vector.broadcast %5 : vector<8x1xf32> to vector<8x64xf32>
    %7 = arith.mulf %3, %6 : vector<8x64xf32>
    %c0_8 = arith.constant 0 : index
    %c0_9 = arith.constant 0 : index
    %c0_10 = arith.constant 0 : index
    %8 = vector.load %arg6[%c0_8, %c0_9, %c0_10] : memref<1x8x1xf32, #tpu.memory_space<vmem>>, vector<1x8x1xf32>
    %9 = vector.shape_cast %8 : vector<1x8x1xf32> to vector<8x1xf32>
    %10 = vector.broadcast %9 : vector<8x1xf32> to vector<8x64xf32>
    %11 = arith.addf %7, %10 : vector<8x64xf32>
    %12 = arith.truncf %11 : vector<8x64xf32> to vector<8x64xbf16>
    %cst = arith.constant dense<0.000000e+00> : vector<8x64xf32>
    %13 = tpu.matmul %12, %1, %cst {dimension_numbers = #tpu.dot_dimension_numbers<[1], [0], [0], [1], [0, 0, 1, 1], [], []>} : vector<8x64xbf16>, vector<64x64xbf16>, vector<8x64xf32> -> vector<8x64xf32>
    %14 = arith.index_cast %arg0 : i32 to index
    %15 = memref.load %arg8[%14] : memref<2xf32, #tpu.memory_space<smem>>
    %16 = vector.broadcast %15 : f32 to vector<8x64xf32>
    %17 = arith.addf %13, %16 : vector<8x64xf32>
    %c0_11 = arith.constant 0 : index
    %c0_12 = arith.constant 0 : index
    %c0_13 = arith.constant 0 : index
    %18 = vector.load %arg7[%c0_11, %c0_12, %c0_13] : memref<1x8x1xf32, #tpu.memory_space<vmem>>, vector<1x8x1xf32>
    %19 = vector.shape_cast %18 : vector<1x8x1xf32> to vector<8x1xf32>
    %20 = vector.broadcast %19 : vector<8x1xf32> to vector<8x64xf32>
    %21 = arith.mulf %17, %20 : vector<8x64xf32>
    %c0_14 = arith.constant 0 : index
    %c0_15 = arith.constant 0 : index
    %c0_16 = arith.constant 0 : index
    %22 = vector.load %arg9[%c0_14, %c0_15, %c0_16] : memref<1x8x64xf32, #tpu.memory_space<vmem>>, vector<1x8x64xf32>
    %23 = vector.shape_cast %22 : vector<1x8x64xf32> to vector<8x64xf32>
    %24 = vector.shape_cast %21 : vector<8x64xf32> to vector<1x8x64xf32>
    tpu.vector_store %arg9[%c0_14, %c0_15, %c0_16], %24 {strides = array<i32>} : memref<1x8x64xf32, #tpu.memory_space<vmem>>, vector<1x8x64xf32>,
    return
  }
  func.func @transform_0(%arg0: i32, %arg1: i32, %arg2: i32) -> (i32, i32, i32) {
    %c0_i32 = arith.constant 0 : i32
    %c0_i32_0 = arith.constant 0 : i32
    return %arg0, %arg2, %c0_i32 : i32, i32, i32
  }
  func.func @transform_1(%arg0: i32, %arg1: i32, %arg2: i32) -> (i32, i32, i32) {
    %c0_i32 = arith.constant 0 : i32
    %c0_i32_0 = arith.constant 0 : i32
    return %arg0, %c0_i32, %arg1 : i32, i32, i32
  }
  func.func @transform_2(%arg0: i32, %arg1: i32, %arg2: i32) -> (i32, i32, i32) {
    %c0_i32 = arith.constant 0 : i32
    %c0_i32_0 = arith.constant 0 : i32
    return %arg0, %arg2, %c0_i32 : i32, i32, i32
  }
  func.func @transform_3(%arg0: i32, %arg1: i32, %arg2: i32) -> (i32, i32, i32) {
    %c0_i32 = arith.constant 0 : i32
    %c0_i32_0 = arith.constant 0 : i32
    return %arg0, %arg2, %c0_i32 : i32, i32, i32
  }
  func.func @transform_4(%arg0: i32, %arg1: i32, %arg2: i32) -> (i32, i32, i32) {
    %c0_i32 = arith.constant 0 : i32
    %c0_i32_0 = arith.constant 0 : i32
    return %arg0, %arg2, %c0_i32 : i32, i32, i32
  }
  func.func @transform_5(%arg0: i32, %arg1: i32, %arg2: i32) -> i32 {
    %c0_i32 = arith.constant 0 : i32
    %c0_i32_0 = arith.constant 0 : i32
    return %c0_i32 : i32
  }
  func.func @transform_6(%arg0: i32, %arg1: i32, %arg2: i32) -> (i32, i32, i32) {
    %c0_i32 = arith.constant 0 : i32
    return %arg0, %arg2, %arg1 : i32, i32, i32
  }
}

module attributes {stable_mosaic.version = 11 : i64} {
  func.func @_bmm_bias_act_kernel(%arg0: i32, %arg1: i32, %arg2: i32, %arg3: memref<1x8x64xf32, #tpu.memory_space<vmem>>, %arg4: memref<32x8xbf16, #tpu.memory_space<vmem>>, %arg5: memref<32x1xf32, #tpu.memory_space<vmem>>, %arg6: memref<1x32x64xf32, #tpu.memory_space<vmem>>) attributes {dimension_semantics = [#tpu.dimension_semantics<parallel>, #tpu.dimension_semantics<parallel>, #tpu.dimension_semantics<parallel>], iteration_bounds = array<i64: 1, 1, 2>, scalar_prefetch = 0 : i64, scratch_operands = 0 : i64, tpu.core_type = #tpu.core_type<tc>, window_params = [{transform_indices = @transform_0, window_bounds = array<i64: 1, 8, 64>}, {transform_indices = @transform_1, window_bounds = array<i64: 32, 8>}, {transform_indices = @transform_2, window_bounds = array<i64: 32, 1>}, {transform_indices = @transform_3, window_bounds = array<i64: 1, 32, 64>}]} {
    %c0 = arith.constant 0 : index
    %c0_0 = arith.constant 0 : index
    %0 = vector.load %arg4[%c0, %c0_0] : memref<32x8xbf16, #tpu.memory_space<vmem>>, vector<32x8xbf16>
    %c0_1 = arith.constant 0 : index
    %c0_2 = arith.constant 0 : index
    %c0_3 = arith.constant 0 : index
    %1 = vector.load %arg3[%c0_1, %c0_2, %c0_3] : memref<1x8x64xf32, #tpu.memory_space<vmem>>, vector<1x8x64xf32>
    %2 = vector.shape_cast %1 : vector<1x8x64xf32> to vector<8x64xf32>
    %3 = arith.truncf %2 : vector<8x64xf32> to vector<8x64xbf16>
    %cst = arith.constant dense<0.000000e+00> : vector<32x64xf32>
    %4 = tpu.matmul %0, %3, %cst {dimension_numbers = #tpu.dot_dimension_numbers<[1], [0], [0], [1], [0, 0, 1, 1], [], []>} : vector<32x8xbf16>, vector<8x64xbf16>, vector<32x64xf32> -> vector<32x64xf32>
    %c0_4 = arith.constant 0 : index
    %c0_5 = arith.constant 0 : index
    %5 = vector.load %arg5[%c0_4, %c0_5] : memref<32x1xf32, #tpu.memory_space<vmem>>, vector<32x1xf32>
    %6 = vector.broadcast %5 : vector<32x1xf32> to vector<32x64xf32>
    %7 = arith.addf %4, %6 : vector<32x64xf32>
    %8 = arith.mulf %7, %7 : vector<32x64xf32>
    %9 = arith.mulf %7, %8 : vector<32x64xf32>
    %cst_6 = arith.constant 4.471500e-02 : f32
    %10 = vector.broadcast %cst_6 : f32 to vector<32x64xf32>
    %11 = arith.mulf %10, %9 : vector<32x64xf32>
    %12 = arith.addf %7, %11 : vector<32x64xf32>
    %cst_7 = arith.constant 0.797884583 : f32
    %13 = vector.broadcast %cst_7 : f32 to vector<32x64xf32>
    %14 = arith.mulf %13, %12 : vector<32x64xf32>
    %15 = math.tanh %14 : vector<32x64xf32>
    %cst_8 = arith.constant 1.000000e+00 : f32
    %16 = vector.broadcast %cst_8 : f32 to vector<32x64xf32>
    %17 = arith.addf %16, %15 : vector<32x64xf32>
    %cst_9 = arith.constant 5.000000e-01 : f32
    %18 = vector.broadcast %cst_9 : f32 to vector<32x64xf32>
    %19 = arith.mulf %18, %17 : vector<32x64xf32>
    %20 = arith.mulf %7, %19 : vector<32x64xf32>
    %c0_10 = arith.constant 0 : index
    %c0_11 = arith.constant 0 : index
    %c0_12 = arith.constant 0 : index
    %21 = vector.load %arg6[%c0_10, %c0_11, %c0_12] : memref<1x32x64xf32, #tpu.memory_space<vmem>>, vector<1x32x64xf32>
    %22 = vector.shape_cast %21 : vector<1x32x64xf32> to vector<32x64xf32>
    %23 = vector.shape_cast %20 : vector<32x64xf32> to vector<1x32x64xf32>
    tpu.vector_store %arg6[%c0_10, %c0_11, %c0_12], %23 {strides = array<i32>} : memref<1x32x64xf32, #tpu.memory_space<vmem>>, vector<1x32x64xf32>,
    return
  }
  func.func @transform_0(%arg0: i32, %arg1: i32, %arg2: i32) -> (i32, i32, i32) {
    %c0_i32 = arith.constant 0 : i32
    %c0_i32_0 = arith.constant 0 : i32
    return %arg2, %c0_i32, %arg1 : i32, i32, i32
  }
  func.func @transform_1(%arg0: i32, %arg1: i32, %arg2: i32) -> (i32, i32) {
    %c0_i32 = arith.constant 0 : i32
    %c0_i32_0 = arith.constant 0 : i32
    return %arg0, %c0_i32 : i32, i32
  }
  func.func @transform_2(%arg0: i32, %arg1: i32, %arg2: i32) -> (i32, i32) {
    %c0_i32 = arith.constant 0 : i32
    %c0_i32_0 = arith.constant 0 : i32
    return %arg0, %c0_i32 : i32, i32
  }
  func.func @transform_3(%arg0: i32, %arg1: i32, %arg2: i32) -> (i32, i32, i32) {
    %c0_i32 = arith.constant 0 : i32
    return %arg2, %arg0, %arg1 : i32, i32, i32
  }
}

module attributes {stable_mosaic.version = 11 : i64} {
  func.func @_bmm_bias_act_kernel(%arg0: i32, %arg1: i32, %arg2: i32, %arg3: memref<1x32x64xf32, #tpu.memory_space<vmem>>, %arg4: memref<8x32xbf16, #tpu.memory_space<vmem>>, %arg5: memref<8x1xf32, #tpu.memory_space<vmem>>, %arg6: memref<1x8x64xf32, #tpu.memory_space<vmem>>, %arg7: memref<1x8x64xf32, #tpu.memory_space<vmem>>) attributes {dimension_semantics = [#tpu.dimension_semantics<parallel>, #tpu.dimension_semantics<parallel>, #tpu.dimension_semantics<parallel>], iteration_bounds = array<i64: 1, 1, 2>, scalar_prefetch = 0 : i64, scratch_operands = 0 : i64, tpu.core_type = #tpu.core_type<tc>, window_params = [{transform_indices = @transform_0, window_bounds = array<i64: 1, 32, 64>}, {transform_indices = @transform_1, window_bounds = array<i64: 8, 32>}, {transform_indices = @transform_2, window_bounds = array<i64: 8, 1>}, {transform_indices = @transform_3, window_bounds = array<i64: 1, 8, 64>}, {transform_indices = @transform_4, window_bounds = array<i64: 1, 8, 64>}]} {
    %c0 = arith.constant 0 : index
    %c0_0 = arith.constant 0 : index
    %0 = vector.load %arg4[%c0, %c0_0] : memref<8x32xbf16, #tpu.memory_space<vmem>>, vector<8x32xbf16>
    %c0_1 = arith.constant 0 : index
    %c0_2 = arith.constant 0 : index
    %c0_3 = arith.constant 0 : index
    %1 = vector.load %arg3[%c0_1, %c0_2, %c0_3] : memref<1x32x64xf32, #tpu.memory_space<vmem>>, vector<1x32x64xf32>
    %2 = vector.shape_cast %1 : vector<1x32x64xf32> to vector<32x64xf32>
    %3 = arith.truncf %2 : vector<32x64xf32> to vector<32x64xbf16>
    %cst = arith.constant dense<0.000000e+00> : vector<8x64xf32>
    %4 = tpu.matmul %0, %3, %cst {dimension_numbers = #tpu.dot_dimension_numbers<[1], [0], [0], [1], [0, 0, 1, 1], [], []>} : vector<8x32xbf16>, vector<32x64xbf16>, vector<8x64xf32> -> vector<8x64xf32>
    %c0_4 = arith.constant 0 : index
    %c0_5 = arith.constant 0 : index
    %5 = vector.load %arg5[%c0_4, %c0_5] : memref<8x1xf32, #tpu.memory_space<vmem>>, vector<8x1xf32>
    %6 = vector.broadcast %5 : vector<8x1xf32> to vector<8x64xf32>
    %7 = arith.addf %4, %6 : vector<8x64xf32>
    %c0_6 = arith.constant 0 : index
    %c0_7 = arith.constant 0 : index
    %c0_8 = arith.constant 0 : index
    %8 = vector.load %arg6[%c0_6, %c0_7, %c0_8] : memref<1x8x64xf32, #tpu.memory_space<vmem>>, vector<1x8x64xf32>
    %9 = vector.shape_cast %8 : vector<1x8x64xf32> to vector<8x64xf32>
    %10 = arith.addf %7, %9 : vector<8x64xf32>
    %c0_9 = arith.constant 0 : index
    %c0_10 = arith.constant 0 : index
    %c0_11 = arith.constant 0 : index
    %11 = vector.load %arg7[%c0_9, %c0_10, %c0_11] : memref<1x8x64xf32, #tpu.memory_space<vmem>>, vector<1x8x64xf32>
    %12 = vector.shape_cast %11 : vector<1x8x64xf32> to vector<8x64xf32>
    %13 = vector.shape_cast %10 : vector<8x64xf32> to vector<1x8x64xf32>
    tpu.vector_store %arg7[%c0_9, %c0_10, %c0_11], %13 {strides = array<i32>} : memref<1x8x64xf32, #tpu.memory_space<vmem>>, vector<1x8x64xf32>,
    return
  }
  func.func @transform_0(%arg0: i32, %arg1: i32, %arg2: i32) -> (i32, i32, i32) {
    %c0_i32 = arith.constant 0 : i32
    %c0_i32_0 = arith.constant 0 : i32
    return %arg2, %c0_i32, %arg1 : i32, i32, i32
  }
  func.func @transform_1(%arg0: i32, %arg1: i32, %arg2: i32) -> (i32, i32) {
    %c0_i32 = arith.constant 0 : i32
    %c0_i32_0 = arith.constant 0 : i32
    return %arg0, %c0_i32 : i32, i32
  }
  func.func @transform_2(%arg0: i32, %arg1: i32, %arg2: i32) -> (i32, i32) {
    %c0_i32 = arith.constant 0 : i32
    %c0_i32_0 = arith.constant 0 : i32
    return %arg0, %c0_i32 : i32, i32
  }
  func.func @transform_3(%arg0: i32, %arg1: i32, %arg2: i32) -> (i32, i32, i32) {
    %c0_i32 = arith.constant 0 : i32
    return %arg2, %arg0, %arg1 : i32, i32, i32
  }
  func.func @transform_4(%arg0: i32, %arg1: i32, %arg2: i32) -> (i32, i32, i32) {
    %c0_i32 = arith.constant 0 : i32
    return %arg2, %arg0, %arg1 : i32, i32, i32
  }
}

module attributes {stable_mosaic.version = 11 : i64} {
  func.func @_bmm_bias_act_kernel(%arg0: i32, %arg1: i32, %arg2: i32, %arg3: memref<1x32x16xf32, #tpu.memory_space<vmem>>, %arg4: memref<16x32xbf16, #tpu.memory_space<vmem>>, %arg5: memref<16x1xf32, #tpu.memory_space<vmem>>, %arg6: memref<1x16x16xf32, #tpu.memory_space<vmem>>) attributes {dimension_semantics = [#tpu.dimension_semantics<parallel>, #tpu.dimension_semantics<parallel>, #tpu.dimension_semantics<parallel>], iteration_bounds = array<i64: 1, 1, 2>, scalar_prefetch = 0 : i64, scratch_operands = 0 : i64, tpu.core_type = #tpu.core_type<tc>, window_params = [{transform_indices = @transform_0, window_bounds = array<i64: 1, 32, 16>}, {transform_indices = @transform_1, window_bounds = array<i64: 16, 32>}, {transform_indices = @transform_2, window_bounds = array<i64: 16, 1>}, {transform_indices = @transform_3, window_bounds = array<i64: 1, 16, 16>}]} {
    %c0 = arith.constant 0 : index
    %c0_0 = arith.constant 0 : index
    %0 = vector.load %arg4[%c0, %c0_0] : memref<16x32xbf16, #tpu.memory_space<vmem>>, vector<16x32xbf16>
    %c0_1 = arith.constant 0 : index
    %c0_2 = arith.constant 0 : index
    %c0_3 = arith.constant 0 : index
    %1 = vector.load %arg3[%c0_1, %c0_2, %c0_3] : memref<1x32x16xf32, #tpu.memory_space<vmem>>, vector<1x32x16xf32>
    %2 = vector.shape_cast %1 : vector<1x32x16xf32> to vector<32x16xf32>
    %3 = arith.truncf %2 : vector<32x16xf32> to vector<32x16xbf16>
    %cst = arith.constant dense<0.000000e+00> : vector<16x16xf32>
    %4 = tpu.matmul %0, %3, %cst {dimension_numbers = #tpu.dot_dimension_numbers<[1], [0], [0], [1], [0, 0, 1, 1], [], []>} : vector<16x32xbf16>, vector<32x16xbf16>, vector<16x16xf32> -> vector<16x16xf32>
    %c0_4 = arith.constant 0 : index
    %c0_5 = arith.constant 0 : index
    %5 = vector.load %arg5[%c0_4, %c0_5] : memref<16x1xf32, #tpu.memory_space<vmem>>, vector<16x1xf32>
    %6 = vector.broadcast %5 : vector<16x1xf32> to vector<16x16xf32>
    %7 = arith.addf %4, %6 : vector<16x16xf32>
    %cst_6 = arith.constant 0.000000e+00 : f32
    %8 = vector.broadcast %cst_6 : f32 to vector<16x16xf32>
    %9 = arith.maximumf %7, %8 : vector<16x16xf32>
    %c0_7 = arith.constant 0 : index
    %c0_8 = arith.constant 0 : index
    %c0_9 = arith.constant 0 : index
    %10 = vector.load %arg6[%c0_7, %c0_8, %c0_9] : memref<1x16x16xf32, #tpu.memory_space<vmem>>, vector<1x16x16xf32>
    %11 = vector.shape_cast %10 : vector<1x16x16xf32> to vector<16x16xf32>
    %12 = vector.shape_cast %9 : vector<16x16xf32> to vector<1x16x16xf32>
    tpu.vector_store %arg6[%c0_7, %c0_8, %c0_9], %12 {strides = array<i32>} : memref<1x16x16xf32, #tpu.memory_space<vmem>>, vector<1x16x16xf32>,
    return
  }
  func.func @transform_0(%arg0: i32, %arg1: i32, %arg2: i32) -> (i32, i32, i32) {
    %c0_i32 = arith.constant 0 : i32
    %c0_i32_0 = arith.constant 0 : i32
    return %arg2, %c0_i32, %arg1 : i32, i32, i32
  }
  func.func @transform_1(%arg0: i32, %arg1: i32, %arg2: i32) -> (i32, i32) {
    %c0_i32 = arith.constant 0 : i32
    %c0_i32_0 = arith.constant 0 : i32
    return %arg0, %c0_i32 : i32, i32
  }
  func.func @transform_2(%arg0: i32, %arg1: i32, %arg2: i32) -> (i32, i32) {
    %c0_i32 = arith.constant 0 : i32
    %c0_i32_0 = arith.constant 0 : i32
    return %arg0, %c0_i32 : i32, i32
  }
  func.func @transform_3(%arg0: i32, %arg1: i32, %arg2: i32) -> (i32, i32, i32) {
    %c0_i32 = arith.constant 0 : i32
    return %arg2, %arg0, %arg1 : i32, i32, i32
  }
}

module attributes {stable_mosaic.version = 11 : i64} {
  func.func @_row_pool_kernel(%arg0: i32, %arg1: i32, %arg2: memref<32x16xf32, #tpu.memory_space<vmem>>, %arg3: memref<32x1xf32, #tpu.memory_space<vmem>>) attributes {dimension_semantics = [#tpu.dimension_semantics<parallel>, #tpu.dimension_semantics<arbitrary>], iteration_bounds = array<i64: 1, 1>, scalar_prefetch = 0 : i64, scratch_operands = 0 : i64, tpu.core_type = #tpu.core_type<tc>, window_params = [{transform_indices = @transform_0, window_bounds = array<i64: 32, 16>}, {transform_indices = @transform_1, window_bounds = array<i64: 32, 1>}]} {
    %c0_i32 = arith.constant 0 : i32
    %0 = arith.cmpi eq, %arg1, %c0_i32 : i32
    %1 = arith.extui %0 : i1 to i32
    %c0_i32_0 = arith.constant 0 : i32
    %2 = arith.cmpi ne, %1, %c0_i32_0 : i32
    scf.if %2 {
      %cst_8 = arith.constant 0.000000e+00 : f32
      %12 = vector.broadcast %cst_8 : f32 to vector<32x1xf32>
      %c0_9 = arith.constant 0 : index
      %c0_10 = arith.constant 0 : index
      %13 = vector.load %arg3[%c0_9, %c0_10] : memref<32x1xf32, #tpu.memory_space<vmem>>, vector<32x1xf32>
      tpu.vector_store %arg3[%c0_9, %c0_10], %12 {strides = array<i32>} : memref<32x1xf32, #tpu.memory_space<vmem>>, vector<32x1xf32>,
    } else {
    }
    %c0 = arith.constant 0 : index
    %c0_1 = arith.constant 0 : index
    %3 = vector.load %arg3[%c0, %c0_1] : memref<32x1xf32, #tpu.memory_space<vmem>>, vector<32x1xf32>
    %c0_2 = arith.constant 0 : index
    %c0_3 = arith.constant 0 : index
    %4 = vector.load %arg2[%c0_2, %c0_3] : memref<32x16xf32, #tpu.memory_space<vmem>>, vector<32x16xf32>
    %cst = arith.constant dense<0.000000e+00> : vector<32xf32>
    %5 = vector.multi_reduction <add>, %4, %cst [1] : vector<32x16xf32> to vector<32xf32>
    %6 = vector.shape_cast %5 : vector<32xf32> to vector<32x1xf32>
    %7 = arith.addf %3, %6 : vector<32x1xf32>
    %c0_4 = arith.constant 0 : index
    %c0_5 = arith.constant 0 : index
    %8 = vector.load %arg3[%c0_4, %c0_5] : memref<32x1xf32, #tpu.memory_space<vmem>>, vector<32x1xf32>
    tpu.vector_store %arg3[%c0_4, %c0_5], %7 {strides = array<i32>} : memref<32x1xf32, #tpu.memory_space<vmem>>, vector<32x1xf32>,
    %c0_i32_6 = arith.constant 0 : i32
    %9 = arith.cmpi eq, %arg1, %c0_i32_6 : i32
    %10 = arith.extui %9 : i1 to i32
    %c0_i32_7 = arith.constant 0 : i32
    %11 = arith.cmpi ne, %10, %c0_i32_7 : i32
    scf.if %11 {
      %c0_8 = arith.constant 0 : index
      %c0_9 = arith.constant 0 : index
      %12 = vector.load %arg3[%c0_8, %c0_9] : memref<32x1xf32, #tpu.memory_space<vmem>>, vector<32x1xf32>
      %cst_10 = arith.constant 6.250000e-02 : f32
      %13 = vector.broadcast %cst_10 : f32 to vector<32x1xf32>
      %14 = arith.mulf %12, %13 : vector<32x1xf32>
      %c0_11 = arith.constant 0 : index
      %c0_12 = arith.constant 0 : index
      %15 = vector.load %arg3[%c0_11, %c0_12] : memref<32x1xf32, #tpu.memory_space<vmem>>, vector<32x1xf32>
      tpu.vector_store %arg3[%c0_11, %c0_12], %14 {strides = array<i32>} : memref<32x1xf32, #tpu.memory_space<vmem>>, vector<32x1xf32>,
    } else {
    }
    return
  }
  func.func @transform_0(%arg0: i32, %arg1: i32) -> (i32, i32) {
    %c0_i32 = arith.constant 0 : i32
    return %arg0, %arg1 : i32, i32
  }
  func.func @transform_1(%arg0: i32, %arg1: i32) -> (i32, i32) {
    %c0_i32 = arith.constant 0 : i32
    %c0_i32_0 = arith.constant 0 : i32
    return %arg0, %c0_i32 : i32, i32
  }
}

module attributes {stable_mosaic.version = 11 : i64} {
  func.func @_gp_kernel(%arg0: memref<2x16xf32, #tpu.memory_space<vmem>>, %arg1: memref<16x4xf32, #tpu.memory_space<vmem>>, %arg2: memref<1x4xf32, #tpu.memory_space<vmem>>, %arg3: memref<4x16xf32, #tpu.memory_space<vmem>>, %arg4: memref<1x16xf32, #tpu.memory_space<vmem>>, %arg5: memref<2x16xf32, #tpu.memory_space<vmem>>) attributes {dimension_semantics = [], scalar_prefetch = 0 : i64, scratch_operands = 0 : i64, tpu.core_type = #tpu.core_type<tc>} {
    %c0 = arith.constant 0 : index
    %c0_0 = arith.constant 0 : index
    %0 = vector.load %arg0[%c0, %c0_0] : memref<2x16xf32, #tpu.memory_space<vmem>>, vector<2x16xf32>
    %c0_1 = arith.constant 0 : index
    %c0_2 = arith.constant 0 : index
    %1 = vector.load %arg1[%c0_1, %c0_2] : memref<16x4xf32, #tpu.memory_space<vmem>>, vector<16x4xf32>
    %cst = arith.constant dense<0.000000e+00> : vector<2x4xf32>
    %2 = tpu.matmul %0, %1, %cst {dimension_numbers = #tpu.dot_dimension_numbers<[1], [0], [0], [1], [0, 0, 1, 1], [], []>} : vector<2x16xf32>, vector<16x4xf32>, vector<2x4xf32> -> vector<2x4xf32>
    %c0_3 = arith.constant 0 : index
    %c0_4 = arith.constant 0 : index
    %3 = vector.load %arg2[%c0_3, %c0_4] : memref<1x4xf32, #tpu.memory_space<vmem>>, vector<1x4xf32>
    %4 = vector.broadcast %3 : vector<1x4xf32> to vector<2x4xf32>
    %5 = arith.addf %2, %4 : vector<2x4xf32>
    %cst_5 = arith.constant 0.000000e+00 : f32
    %6 = vector.broadcast %cst_5 : f32 to vector<2x4xf32>
    %7 = arith.maximumf %5, %6 : vector<2x4xf32>
    %c0_6 = arith.constant 0 : index
    %c0_7 = arith.constant 0 : index
    %8 = vector.load %arg3[%c0_6, %c0_7] : memref<4x16xf32, #tpu.memory_space<vmem>>, vector<4x16xf32>
    %cst_8 = arith.constant dense<0.000000e+00> : vector<2x16xf32>
    %9 = tpu.matmul %7, %8, %cst_8 {dimension_numbers = #tpu.dot_dimension_numbers<[1], [0], [0], [1], [0, 0, 1, 1], [], []>} : vector<2x4xf32>, vector<4x16xf32>, vector<2x16xf32> -> vector<2x16xf32>
    %c0_9 = arith.constant 0 : index
    %c0_10 = arith.constant 0 : index
    %10 = vector.load %arg4[%c0_9, %c0_10] : memref<1x16xf32, #tpu.memory_space<vmem>>, vector<1x16xf32>
    %11 = vector.broadcast %10 : vector<1x16xf32> to vector<2x16xf32>
    %12 = arith.addf %9, %11 : vector<2x16xf32>
    %13 = arith.negf %12 : vector<2x16xf32>
    %14 = math.exp %13 : vector<2x16xf32>
    %cst_11 = arith.constant 1.000000e+00 : f32
    %15 = vector.broadcast %cst_11 : f32 to vector<2x16xf32>
    %16 = arith.addf %15, %14 : vector<2x16xf32>
    %17 = arith.divf %15, %16 : vector<2x16xf32>
    %c0_12 = arith.constant 0 : index
    %c0_13 = arith.constant 0 : index
    %18 = vector.load %arg5[%c0_12, %c0_13] : memref<2x16xf32, #tpu.memory_space<vmem>>, vector<2x16xf32>
    tpu.vector_store %arg5[%c0_12, %c0_13], %17 {strides = array<i32>} : memref<2x16xf32, #tpu.memory_space<vmem>>, vector<2x16xf32>,
    return
  }
}

module attributes {stable_mosaic.version = 11 : i64} {
  func.func @_grouped_fc_kernel(%arg0: i32, %arg1: i32, %arg2: i32, %arg3: memref<1x8x16xf32, #tpu.memory_space<vmem>>, %arg4: memref<1x16x16xbf16, #tpu.memory_space<vmem>>, %arg5: memref<1x8x1xf32, #tpu.memory_space<vmem>>, %arg6: memref<1x8x1xf32, #tpu.memory_space<vmem>>, %arg7: memref<1x8x1xf32, #tpu.memory_space<vmem>>, %arg8: memref<4xf32, #tpu.memory_space<smem>>, %arg9: memref<1x8x16xf32, #tpu.memory_space<vmem>>) attributes {dimension_semantics = [#tpu.dimension_semantics<parallel>, #tpu.dimension_semantics<parallel>, #tpu.dimension_semantics<parallel>], iteration_bounds = array<i64: 4, 1, 1>, scalar_prefetch = 0 : i64, scratch_operands = 0 : i64, tpu.core_type = #tpu.core_type<tc>, window_params = [{transform_indices = @transform_0, window_bounds = array<i64: 1, 8, 16>}, {transform_indices = @transform_1, window_bounds = array<i64: 1, 16, 16>}, {transform_indices = @transform_2, window_bounds = array<i64: 1, 8, 1>}, {transform_indices = @transform_3, window_bounds = array<i64: 1, 8, 1>}, {transform_indices = @transform_4, window_bounds = array<i64: 1, 8, 1>}, {transform_indices = @transform_5, window_bounds = array<i64: 4>}, {transform_indices = @transform_6, window_bounds = array<i64: 1, 8, 16>}]} {
    %c0 = arith.constant 0 : index
    %c0_0 = arith.constant 0 : index
    %c0_1 = arith.constant 0 : index
    %0 = vector.load %arg4[%c0, %c0_0, %c0_1] : memref<1x16x16xbf16, #tpu.memory_space<vmem>>, vector<1x16x16xbf16>
    %1 = vector.shape_cast %0 : vector<1x16x16xbf16> to vector<16x16xbf16>
    %c0_2 = arith.constant 0 : index
    %c0_3 = arith.constant 0 : index
    %c0_4 = arith.constant 0 : index
    %2 = vector.load %arg3[%c0_2, %c0_3, %c0_4] : memref<1x8x16xf32, #tpu.memory_space<vmem>>, vector<1x8x16xf32>
    %3 = vector.shape_cast %2 : vector<1x8x16xf32> to vector<8x16xf32>
    %c0_5 = arith.constant 0 : index
    %c0_6 = arith.constant 0 : index
    %c0_7 = arith.constant 0 : index
    %4 = vector.load %arg5[%c0_5, %c0_6, %c0_7] : memref<1x8x1xf32, #tpu.memory_space<vmem>>, vector<1x8x1xf32>
    %5 = vector.shape_cast %4 : vector<1x8x1xf32> to vector<8x1xf32>
    %6 = vector.broadcast %5 : vector<8x1xf32> to vector<8x16xf32>
    %7 = arith.mulf %3, %6 : vector<8x16xf32>
    %c0_8 = arith.constant 0 : index
    %c0_9 = arith.constant 0 : index
    %c0_10 = arith.constant 0 : index
    %8 = vector.load %arg6[%c0_8, %c0_9, %c0_10] : memref<1x8x1xf32, #tpu.memory_space<vmem>>, vector<1x8x1xf32>
    %9 = vector.shape_cast %8 : vector<1x8x1xf32> to vector<8x1xf32>
    %10 = vector.broadcast %9 : vector<8x1xf32> to vector<8x16xf32>
    %11 = arith.addf %7, %10 : vector<8x16xf32>
    %12 = arith.truncf %11 : vector<8x16xf32> to vector<8x16xbf16>
    %cst = arith.constant dense<0.000000e+00> : vector<8x16xf32>
    %13 = tpu.matmul %12, %1, %cst {dimension_numbers = #tpu.dot_dimension_numbers<[1], [0], [0], [1], [0, 0, 1, 1], [], []>} : vector<8x16xbf16>, vector<16x16xbf16>, vector<8x16xf32> -> vector<8x16xf32>
    %14 = arith.index_cast %arg0 : i32 to index
    %15 = memref.load %arg8[%14] : memref<4xf32, #tpu.memory_space<smem>>
    %16 = vector.broadcast %15 : f32 to vector<8x16xf32>
    %17 = arith.addf %13, %16 : vector<8x16xf32>
    %c0_11 = arith.constant 0 : index
    %c0_12 = arith.constant 0 : index
    %c0_13 = arith.constant 0 : index
    %18 = vector.load %arg7[%c0_11, %c0_12, %c0_13] : memref<1x8x1xf32, #tpu.memory_space<vmem>>, vector<1x8x1xf32>
    %19 = vector.shape_cast %18 : vector<1x8x1xf32> to vector<8x1xf32>
    %20 = vector.broadcast %19 : vector<8x1xf32> to vector<8x16xf32>
    %21 = arith.mulf %17, %20 : vector<8x16xf32>
    %c0_14 = arith.constant 0 : index
    %c0_15 = arith.constant 0 : index
    %c0_16 = arith.constant 0 : index
    %22 = vector.load %arg9[%c0_14, %c0_15, %c0_16] : memref<1x8x16xf32, #tpu.memory_space<vmem>>, vector<1x8x16xf32>
    %23 = vector.shape_cast %22 : vector<1x8x16xf32> to vector<8x16xf32>
    %24 = vector.shape_cast %21 : vector<8x16xf32> to vector<1x8x16xf32>
    tpu.vector_store %arg9[%c0_14, %c0_15, %c0_16], %24 {strides = array<i32>} : memref<1x8x16xf32, #tpu.memory_space<vmem>>, vector<1x8x16xf32>,
    return
  }
  func.func @transform_0(%arg0: i32, %arg1: i32, %arg2: i32) -> (i32, i32, i32) {
    %c0_i32 = arith.constant 0 : i32
    %c0_i32_0 = arith.constant 0 : i32
    return %arg0, %arg2, %c0_i32 : i32, i32, i32
  }
  func.func @transform_1(%arg0: i32, %arg1: i32, %arg2: i32) -> (i32, i32, i32) {
    %c0_i32 = arith.constant 0 : i32
    %c0_i32_0 = arith.constant 0 : i32
    return %arg0, %c0_i32, %arg1 : i32, i32, i32
  }
  func.func @transform_2(%arg0: i32, %arg1: i32, %arg2: i32) -> (i32, i32, i32) {
    %c0_i32 = arith.constant 0 : i32
    %c0_i32_0 = arith.constant 0 : i32
    return %arg0, %arg2, %c0_i32 : i32, i32, i32
  }
  func.func @transform_3(%arg0: i32, %arg1: i32, %arg2: i32) -> (i32, i32, i32) {
    %c0_i32 = arith.constant 0 : i32
    %c0_i32_0 = arith.constant 0 : i32
    return %arg0, %arg2, %c0_i32 : i32, i32, i32
  }
  func.func @transform_4(%arg0: i32, %arg1: i32, %arg2: i32) -> (i32, i32, i32) {
    %c0_i32 = arith.constant 0 : i32
    %c0_i32_0 = arith.constant 0 : i32
    return %arg0, %arg2, %c0_i32 : i32, i32, i32
  }
  func.func @transform_5(%arg0: i32, %arg1: i32, %arg2: i32) -> i32 {
    %c0_i32 = arith.constant 0 : i32
    %c0_i32_0 = arith.constant 0 : i32
    return %c0_i32 : i32
  }
  func.func @transform_6(%arg0: i32, %arg1: i32, %arg2: i32) -> (i32, i32, i32) {
    %c0_i32 = arith.constant 0 : i32
    return %arg0, %arg2, %arg1 : i32, i32, i32
  }
}

module attributes {stable_mosaic.version = 11 : i64} {
  func.func @_bmm_bias_act_kernel(%arg0: i32, %arg1: i32, %arg2: i32, %arg3: memref<1x16x16xf32, #tpu.memory_space<vmem>>, %arg4: memref<64x16xbf16, #tpu.memory_space<vmem>>, %arg5: memref<64x1xf32, #tpu.memory_space<vmem>>, %arg6: memref<1x64x16xf32, #tpu.memory_space<vmem>>) attributes {dimension_semantics = [#tpu.dimension_semantics<parallel>, #tpu.dimension_semantics<parallel>, #tpu.dimension_semantics<parallel>], iteration_bounds = array<i64: 1, 1, 2>, scalar_prefetch = 0 : i64, scratch_operands = 0 : i64, tpu.core_type = #tpu.core_type<tc>, window_params = [{transform_indices = @transform_0, window_bounds = array<i64: 1, 16, 16>}, {transform_indices = @transform_1, window_bounds = array<i64: 64, 16>}, {transform_indices = @transform_2, window_bounds = array<i64: 64, 1>}, {transform_indices = @transform_3, window_bounds = array<i64: 1, 64, 16>}]} {
    %c0 = arith.constant 0 : index
    %c0_0 = arith.constant 0 : index
    %0 = vector.load %arg4[%c0, %c0_0] : memref<64x16xbf16, #tpu.memory_space<vmem>>, vector<64x16xbf16>
    %c0_1 = arith.constant 0 : index
    %c0_2 = arith.constant 0 : index
    %c0_3 = arith.constant 0 : index
    %1 = vector.load %arg3[%c0_1, %c0_2, %c0_3] : memref<1x16x16xf32, #tpu.memory_space<vmem>>, vector<1x16x16xf32>
    %2 = vector.shape_cast %1 : vector<1x16x16xf32> to vector<16x16xf32>
    %3 = arith.truncf %2 : vector<16x16xf32> to vector<16x16xbf16>
    %cst = arith.constant dense<0.000000e+00> : vector<64x16xf32>
    %4 = tpu.matmul %0, %3, %cst {dimension_numbers = #tpu.dot_dimension_numbers<[1], [0], [0], [1], [0, 0, 1, 1], [], []>} : vector<64x16xbf16>, vector<16x16xbf16>, vector<64x16xf32> -> vector<64x16xf32>
    %c0_4 = arith.constant 0 : index
    %c0_5 = arith.constant 0 : index
    %5 = vector.load %arg5[%c0_4, %c0_5] : memref<64x1xf32, #tpu.memory_space<vmem>>, vector<64x1xf32>
    %6 = vector.broadcast %5 : vector<64x1xf32> to vector<64x16xf32>
    %7 = arith.addf %4, %6 : vector<64x16xf32>
    %8 = arith.mulf %7, %7 : vector<64x16xf32>
    %9 = arith.mulf %7, %8 : vector<64x16xf32>
    %cst_6 = arith.constant 4.471500e-02 : f32
    %10 = vector.broadcast %cst_6 : f32 to vector<64x16xf32>
    %11 = arith.mulf %10, %9 : vector<64x16xf32>
    %12 = arith.addf %7, %11 : vector<64x16xf32>
    %cst_7 = arith.constant 0.797884583 : f32
    %13 = vector.broadcast %cst_7 : f32 to vector<64x16xf32>
    %14 = arith.mulf %13, %12 : vector<64x16xf32>
    %15 = math.tanh %14 : vector<64x16xf32>
    %cst_8 = arith.constant 1.000000e+00 : f32
    %16 = vector.broadcast %cst_8 : f32 to vector<64x16xf32>
    %17 = arith.addf %16, %15 : vector<64x16xf32>
    %cst_9 = arith.constant 5.000000e-01 : f32
    %18 = vector.broadcast %cst_9 : f32 to vector<64x16xf32>
    %19 = arith.mulf %18, %17 : vector<64x16xf32>
    %20 = arith.mulf %7, %19 : vector<64x16xf32>
    %c0_10 = arith.constant 0 : index
    %c0_11 = arith.constant 0 : index
    %c0_12 = arith.constant 0 : index
    %21 = vector.load %arg6[%c0_10, %c0_11, %c0_12] : memref<1x64x16xf32, #tpu.memory_space<vmem>>, vector<1x64x16xf32>
    %22 = vector.shape_cast %21 : vector<1x64x16xf32> to vector<64x16xf32>
    %23 = vector.shape_cast %20 : vector<64x16xf32> to vector<1x64x16xf32>
    tpu.vector_store %arg6[%c0_10, %c0_11, %c0_12], %23 {strides = array<i32>} : memref<1x64x16xf32, #tpu.memory_space<vmem>>, vector<1x64x16xf32>,
    return
  }
  func.func @transform_0(%arg0: i32, %arg1: i32, %arg2: i32) -> (i32, i32, i32) {
    %c0_i32 = arith.constant 0 : i32
    %c0_i32_0 = arith.constant 0 : i32
    return %arg2, %c0_i32, %arg1 : i32, i32, i32
  }
  func.func @transform_1(%arg0: i32, %arg1: i32, %arg2: i32) -> (i32, i32) {
    %c0_i32 = arith.constant 0 : i32
    %c0_i32_0 = arith.constant 0 : i32
    return %arg0, %c0_i32 : i32, i32
  }
  func.func @transform_2(%arg0: i32, %arg1: i32, %arg2: i32) -> (i32, i32) {
    %c0_i32 = arith.constant 0 : i32
    %c0_i32_0 = arith.constant 0 : i32
    return %arg0, %c0_i32 : i32, i32
  }
  func.func @transform_3(%arg0: i32, %arg1: i32, %arg2: i32) -> (i32, i32, i32) {
    %c0_i32 = arith.constant 0 : i32
    return %arg2, %arg0, %arg1 : i32, i32, i32
  }
}

module attributes {stable_mosaic.version = 11 : i64} {
  func.func @_bmm_bias_act_kernel(%arg0: i32, %arg1: i32, %arg2: i32, %arg3: memref<1x64x16xf32, #tpu.memory_space<vmem>>, %arg4: memref<16x64xbf16, #tpu.memory_space<vmem>>, %arg5: memref<16x1xf32, #tpu.memory_space<vmem>>, %arg6: memref<1x16x16xf32, #tpu.memory_space<vmem>>, %arg7: memref<1x16x16xf32, #tpu.memory_space<vmem>>) attributes {dimension_semantics = [#tpu.dimension_semantics<parallel>, #tpu.dimension_semantics<parallel>, #tpu.dimension_semantics<parallel>], iteration_bounds = array<i64: 1, 1, 2>, scalar_prefetch = 0 : i64, scratch_operands = 0 : i64, tpu.core_type = #tpu.core_type<tc>, window_params = [{transform_indices = @transform_0, window_bounds = array<i64: 1, 64, 16>}, {transform_indices = @transform_1, window_bounds = array<i64: 16, 64>}, {transform_indices = @transform_2, window_bounds = array<i64: 16, 1>}, {transform_indices = @transform_3, window_bounds = array<i64: 1, 16, 16>}, {transform_indices = @transform_4, window_bounds = array<i64: 1, 16, 16>}]} {
    %c0 = arith.constant 0 : index
    %c0_0 = arith.constant 0 : index
    %0 = vector.load %arg4[%c0, %c0_0] : memref<16x64xbf16, #tpu.memory_space<vmem>>, vector<16x64xbf16>
    %c0_1 = arith.constant 0 : index
    %c0_2 = arith.constant 0 : index
    %c0_3 = arith.constant 0 : index
    %1 = vector.load %arg3[%c0_1, %c0_2, %c0_3] : memref<1x64x16xf32, #tpu.memory_space<vmem>>, vector<1x64x16xf32>
    %2 = vector.shape_cast %1 : vector<1x64x16xf32> to vector<64x16xf32>
    %3 = arith.truncf %2 : vector<64x16xf32> to vector<64x16xbf16>
    %cst = arith.constant dense<0.000000e+00> : vector<16x16xf32>
    %4 = tpu.matmul %0, %3, %cst {dimension_numbers = #tpu.dot_dimension_numbers<[1], [0], [0], [1], [0, 0, 1, 1], [], []>} : vector<16x64xbf16>, vector<64x16xbf16>, vector<16x16xf32> -> vector<16x16xf32>
    %c0_4 = arith.constant 0 : index
    %c0_5 = arith.constant 0 : index
    %5 = vector.load %arg5[%c0_4, %c0_5] : memref<16x1xf32, #tpu.memory_space<vmem>>, vector<16x1xf32>
    %6 = vector.broadcast %5 : vector<16x1xf32> to vector<16x16xf32>
    %7 = arith.addf %4, %6 : vector<16x16xf32>
    %c0_6 = arith.constant 0 : index
    %c0_7 = arith.constant 0 : index
    %c0_8 = arith.constant 0 : index
    %8 = vector.load %arg6[%c0_6, %c0_7, %c0_8] : memref<1x16x16xf32, #tpu.memory_space<vmem>>, vector<1x16x16xf32>
    %9 = vector.shape_cast %8 : vector<1x16x16xf32> to vector<16x16xf32>
    %10 = arith.addf %7, %9 : vector<16x16xf32>
    %c0_9 = arith.constant 0 : index
    %c0_10 = arith.constant 0 : index
    %c0_11 = arith.constant 0 : index
    %11 = vector.load %arg7[%c0_9, %c0_10, %c0_11] : memref<1x16x16xf32, #tpu.memory_space<vmem>>, vector<1x16x16xf32>
    %12 = vector.shape_cast %11 : vector<1x16x16xf32> to vector<16x16xf32>
    %13 = vector.shape_cast %10 : vector<16x16xf32> to vector<1x16x16xf32>
    tpu.vector_store %arg7[%c0_9, %c0_10, %c0_11], %13 {strides = array<i32>} : memref<1x16x16xf32, #tpu.memory_space<vmem>>, vector<1x16x16xf32>,
    return
  }
  func.func @transform_0(%arg0: i32, %arg1: i32, %arg2: i32) -> (i32, i32, i32) {
    %c0_i32 = arith.constant 0 : i32
    %c0_i32_0 = arith.constant 0 : i32
    return %arg2, %c0_i32, %arg1 : i32, i32, i32
  }
  func.func @transform_1(%arg0: i32, %arg1: i32, %arg2: i32) -> (i32, i32) {
    %c0_i32 = arith.constant 0 : i32
    %c0_i32_0 = arith.constant 0 : i32
    return %arg0, %c0_i32 : i32, i32
  }
  func.func @transform_2(%arg0: i32, %arg1: i32, %arg2: i32) -> (i32, i32) {
    %c0_i32 = arith.constant 0 : i32
    %c0_i32_0 = arith.constant 0 : i32
    return %arg0, %c0_i32 : i32, i32
  }
  func.func @transform_3(%arg0: i32, %arg1: i32, %arg2: i32) -> (i32, i32, i32) {
    %c0_i32 = arith.constant 0 : i32
    return %arg2, %arg0, %arg1 : i32, i32, i32
  }
  func.func @transform_4(%arg0: i32, %arg1: i32, %arg2: i32) -> (i32, i32, i32) {
    %c0_i32 = arith.constant 0 : i32
    return %arg2, %arg0, %arg1 : i32, i32, i32
  }
}

module attributes {stable_mosaic.version = 11 : i64} {
  func.func @_linear_kernel(%arg0: memref<2x16xf32, #tpu.memory_space<vmem>>, %arg1: memref<16x10xf32, #tpu.memory_space<vmem>>, %arg2: memref<1x10xf32, #tpu.memory_space<vmem>>, %arg3: memref<2x10xf32, #tpu.memory_space<vmem>>) attributes {dimension_semantics = [], scalar_prefetch = 0 : i64, scratch_operands = 0 : i64, tpu.core_type = #tpu.core_type<tc>} {
    %c0 = arith.constant 0 : index
    %c0_0 = arith.constant 0 : index
    %0 = vector.load %arg0[%c0, %c0_0] : memref<2x16xf32, #tpu.memory_space<vmem>>, vector<2x16xf32>
    %c0_1 = arith.constant 0 : index
    %c0_2 = arith.constant 0 : index
    %1 = vector.load %arg1[%c0_1, %c0_2] : memref<16x10xf32, #tpu.memory_space<vmem>>, vector<16x10xf32>
    %cst = arith.constant dense<0.000000e+00> : vector<2x10xf32>
    %2 = tpu.matmul %0, %1, %cst {dimension_numbers = #tpu.dot_dimension_numbers<[1], [0], [0], [1], [0, 0, 1, 1], [], []>} : vector<2x16xf32>, vector<16x10xf32>, vector<2x10xf32> -> vector<2x10xf32>
    %c0_3 = arith.constant 0 : index
    %c0_4 = arith.constant 0 : index
    %3 = vector.load %arg2[%c0_3, %c0_4] : memref<1x10xf32, #tpu.memory_space<vmem>>, vector<1x10xf32>
    %4 = vector.broadcast %3 : vector<1x10xf32> to vector<2x10xf32>
    %5 = arith.addf %2, %4 : vector<2x10xf32>
    %c0_5 = arith.constant 0 : index
    %c0_6 = arith.constant 0 : index
    %6 = vector.load %arg3[%c0_5, %c0_6] : memref<2x10xf32, #tpu.memory_space<vmem>>, vector<2x10xf32>
    tpu.vector_store %arg3[%c0_5, %c0_6], %5 {strides = array<i32>} : memref<2x10xf32, #tpu.memory_space<vmem>>, vector<2x10xf32>,
    return
  }
}

</mosaic_0001>

<bundles_post_ra>
// kernel: _lambda_.14
= control target key start
LH: loop header
LB: loop body
LE: loop exit
PB: predicated region body
PF: predicated region fallthrough
CT: control target
= control target key end

     0   :  { %s529_s12 = smov 0   ;;  %s531_s13 = smov 0   ;;  %s568_s0 = inlined_call_operand.vmem [shape: f32[2,12,64], index: 0, kind: input, shape index: {}]   ;;  %s569_s1 = inlined_call_operand.vmem [shape: bf16[8,12], index: 1, kind: input, shape index: {}]   ;;  %s570_s2 = inlined_call_operand.vmem [shape: f32[8,1], index: 2, kind: input, shape index: {}]   ;;  %s571_s3 = inlined_call_operand.vmem [shape: f32[2,8,64], index: 3, kind: output, shape index: {}]  }
   0x1   :  { %s533_s14 = smov 0  }
   0x2 LB: > { %s25_s15 = sadd.s32 1, %s500_s13  ;;  %p438_p0 = scmp.ge.s32.totalorder %s504_s14, 1  ;;  %s504_s14 = sphi %s533_s14, %s13_s14   ;;  %s500_s13 = sphi %s531_s13, %s573_s13   ;;  %s496_s12 = sphi %s529_s12, %s572_s12  }
   0x3   : > { %p26_p1 = scmp.ge.s32.totalorder %s25_s15, 2  ;;  %p183_p2 = scmp.lt.s32.totalorder %s504_s14, 3 }
   0x5   : > { %s575_s15 = smov (%p26_p1, %s25_s15), 0  ;;  %p184_p3 = pnand %p438_p0, %p183_p2 }
   0x6   : > { %p223_p4 = scmp.lt.s32.totalorder (!%p184_p3), %s496_s12, 1  ;;  %v506_v0 = vmov (!%p184_p3), 0.0   ;;  %vm507_vm0 = vmmov (!%p184_p3), 0   ;;  %v254_v1 = vld [vmem:[%s570_s2] sm:$0xff] (!%p184_p3)  ;;  %v508_v2 = vmov (!%p184_p3), 0   ;;  %vm264_vm1 = vcmask (!%p184_p3), 1045504  }
   0x7   : > { %187 = sbr.rel (%p184_p3) target bundleno = 241 (0xf1), region = 32  ;;  %448 = vmatprep.subr.bf16.mxu0 (!%p184_p3), %v506_v0  ;;  %450 = vmatprep.mubr.msk.bf16.mxu0 (!%p184_p3), %vm507_vm0, %v506_v0  ;;  %v250_v7 = vld [vmem:[%s569_s1] sm:$0xf] (!%p184_p3)  ;;  %vm260_vm2 = vcmask (!%p184_p3), 97280   ;;  %vm309_vm3 = vcmask (!%p184_p3), 523264  }
   0x8   : > { %481 = vset.pattern.permute.xlu0 (!%p184_p3), %v508_v2 }
   0x9   : > { %257 = vperm.xlu0 (!%p184_p3), %481, %v254_v1  }
   0xe   : > { %s577_s12 = smov (!%p223_p4, %s496_s12), 1 }
   0xf   : > { %s445_s18 = sshll.u32 %s577_s12, 4  ;;  %s441_s24 = sshll.u32 %s577_s12, 3 }
  0x10   : > { %s230_s21 = scalar_lea.vmem %s568_s0, %s445_s18  ;;  %s248_s27 = scalar_lea.vmem %s571_s3, %s441_s24 }
  0x11   : > { %v251_v3 = vld [vmem:[%s230_s21] sm:$0xff]  ;;  %v252_v4 = vld [vmem:[%s230_s21 + $0x8] sm:$0xf] }
  0x12   : > { %v253_v5 = vpack.c.bf16 %v252_v4, %v251_v3 }
  0x14   : > { %v266_v6 = vsel %vm264_vm1, %v253_v5, 0 }
  0x15   : > { %449 = vmatpush3.bf16.msra.mxu0 %v266_v6 }
  0x18   : > { %451 = vmatmul.mubr.msk.bf16.vlgmr.msra.gmra.mrb[0].mxu0 %vm260_vm2, %v250_v7 }
  0x88   : > { %v258_v8 = vpop.permute.xlu0 %257 }
  0xeb   : > { %v302_v9 = vpop.f32.mrb[0].mxu0 }
  0xec   : > { %v303_v10 = vadd.f32 %v302_v9, %v258_v8  ;;  %v452_v11 = vpop.f32.mrb[1].mxu0 }
  0xed   : > { %v305_v12 = vpop.f32.mrb[2].mxu0 }
  0xee   : > { %v308_v13 = vmax.f32 %v303_v10, 0.0  ;;  %v453_v14 = vpop.f32.mrb[3].mxu0 }
  0xf0   : > { %310 = vst.msk [vmem:[%s248_s27] sm:$0xff] %vm309_vm3, %v308_v13 }
  0xf1 PF: > { %s13_s14 = sadd.s32 1, %s504_s14   ;;  %s572_s12 = smov %s500_s13 }
  0xf2   : > { %p10_p5 = scmp.ge.s32.totalorder %s13_s14, 4   ;;  %s573_s13 = smov %s575_s15 }
  0xf4   :  { %12 = sbr.rel (!%p10_p5) target bundleno = 2 (0x2), region = 68 }

// kernel: _lambda_.15
= control target key start
LH: loop header
LB: loop body
LE: loop exit
PB: predicated region body
PF: predicated region fallthrough
CT: control target
= control target key end

     0   :  { %vm19_vm0 = vcmask 523264   ;;  %vm12_vm1 = vcmask 7168   ;;  %v45_v2 = vmov 0.0   ;;  %s98_s0 = inlined_call_operand.vmem [shape: f32[16,64], index: 0, kind: input, shape index: {}]   ;;  %s99_s1 = inlined_call_operand.vmem [shape: f32[16,1], index: 1, kind: output, shape index: {}]  }
   0x1   :  { %v17_v0 = vld [vmem:[%s98_s0] sm:$0xff]  ;;  %v18_v1 = vld [vmem:[%s98_s0 + $0x8] sm:$0xff]  ;;  %13 = vst.msk [vmem:[%s99_s1] sm:$0xff] %vm12_vm1, %v45_v2  ;;  %14 = vst.msk [vmem:[%s99_s1 + $0x8] sm:$0xff] %vm12_vm1, %v45_v2 }
   0x2   :  { %v20_v3 = vsel %vm19_vm0, %v17_v0, 0.0  ;;  %v23_v4 = vsel %vm19_vm0, %v18_v1, 0.0 }
   0x3   :  { %21 = vadd.xlane.f32.xlu0 %v20_v3 }
   0x7   :  { %24 = vadd.xlane.f32.xlu0 %v23_v4 }
   0x8   :  { %v15_v5 = vld [vmem:[%s99_s1] sm:$0xff]  ;;  %v16_v8 = vld [vmem:[%s99_s1 + $0x8] sm:$0xff] }
  0x90   :  { %v22_v6 = vpop.xlane.xlu0 %21 }
  0x91   :  { %v26_v7 = vadd.f32 %v22_v6, %v15_v5 }
  0x93   :  { %29 = vst.msk [vmem:[%s99_s1] sm:$0xff] %vm12_vm1, %v26_v7 }
  0x94   :  { %v25_v9 = vpop.xlane.xlu0 %24 }
  0x95   :  { %v27_v10 = vadd.f32 %v25_v9, %v16_v8 }
  0x97   :  { %30 = vst.msk [vmem:[%s99_s1 + $0x8] sm:$0xff] %vm12_vm1, %v27_v10 }
  0x9a   :  { %v34_v11 = vld [vmem:[%s99_s1] sm:$0xff] }
  0x9b   :  { %v36_v12 = vmul.f32 0.015625, %v34_v11 }
  0x9d   :  { %38 = vst.msk [vmem:[%s99_s1] sm:$0xff] %vm12_vm1, %v36_v12 }
  0x9e   :  { %v35_v13 = vld [vmem:[%s99_s1 + $0x8] sm:$0xff] }
  0x9f   :  { %v37_v14 = vmul.f32 0.015625, %v35_v13 }
  0xa1   :  { %39 = vst.msk [vmem:[%s99_s1 + $0x8] sm:$0xff] %vm12_vm1, %v37_v14 }

// kernel: _lambda_.16
= control target key start
LH: loop header
LB: loop body
LE: loop exit
PB: predicated region body
PF: predicated region fallthrough
CT: control target
= control target key end

     0   :  { %vm29_vm0 = vcmask 64512   ;;  %v228_v0 = vmov 0.0   ;;  %vm229_vm1 = vmmov 0   ;;  %vm116_vm2 = vcmask 1041408   ;;  %s278_s1 = inlined_call_operand.vmem [shape: f32[8,2], index: 1, kind: input, shape index: {}]   ;;  %s279_s0 = inlined_call_operand.vmem [shape: f32[2,8], index: 0, kind: input, shape index: {}]   ;;  %s280_s3 = inlined_call_operand.vmem [shape: f32[2,8], index: 3, kind: input, shape index: {}]   ;;  %s281_s2 = inlined_call_operand.vmem [shape: f32[1,2], index: 2, kind: input, shape index: {}]   ;;  %s282_s4 = inlined_call_operand.vmem [shape: f32[1,8], index: 4, kind: input, shape index: {}]   ;;  %s283_s5 = inlined_call_operand.vmem [shape: f32[2,8], index: 5, kind: output, shape index: {}]  }
   0x1   :  { %212 = vmatprep.subr.mxu0 %v228_v0  ;;  %v21_v1 = vld [vmem:[%s278_s1] sm:$0xff]  ;;  %214 = vmatprep.mubr.msk.f32.mxu0 %vm229_vm1, %v228_v0  ;;  %vm112_vm3 = vcmask 15360   ;;  %vm196_vm4 = vcmask 58368  }
   0x2   :  { %v20_v2 = vld [vmem:[%s279_s0] sm:$0x3]  ;;  %213 = vmatpush3.msra.mxu0 %v21_v1  ;;  %217 = vmatprep.subr.mxu1 %v228_v0 }
   0x3   :  { %215 = vmatmul.mubr.msk.f32.vlgmr.msra.gmra.mrb[0].mxu0 %vm29_vm0, %v20_v2  ;;  %219 = vmatprep.mubr.msk.f32.mxu1 %vm229_vm1, %v228_v0  ;;  %v104_v3 = vld [vmem:[%s280_s3] sm:$0x3] }
   0x4   :  { %218 = vmatpush3.msk.msra.mxu1 %vm116_vm2, %v104_v3  ;;  %v202_v4 = vld [vmem:[%s281_s2] ss:$0 sm:$0xff] }
   0x5   :  { %v204_v9 = vld [vmem:[%s282_s4] ss:$0 sm:$0xff] }
  0xd6   :  { %v99_v5 = vpop.f32.mrb[0].mxu0 }
  0xd7   :  { %v100_v6 = vadd.f32 %v202_v4, %v99_v5  ;;  %v216_v7 = vpop.f32.mrb[1].mxu0 }
  0xd9   :  { %v103_v8 = vmax.f32 %v100_v6, 0.0 }
  0xdb   :  { %220 = vmatmul.mubr.msk.f32.vlgmr.msra.gmra.mrb[0].mxu1 %vm112_vm3, %v103_v8 }
 0x1ae   :  { %v186_v10 = vpop.f32.mrb[0].mxu1 }
 0x1af   :  { %v187_v11 = vadd.f32 %v204_v9, %v186_v10  ;;  %v221_v12 = vpop.f32.mrb[1].mxu1 }
 0x1b1   :  { %v207_v13 = vmul.f32 -1.442695, %v187_v11 }
 0x1b3   :  { %224 = vpow2.f32 %v207_v13 }
 0x1bd   :  { %v225_v14 = vpop.eup %224 }
 0x1be   :  { %v193_v15 = vadd.f32 1.0, %v225_v14 }
 0x1c0   :  { %226 = vrcp.f32 %v193_v15 }
 0x1ca   :  { %v227_v16 = vpop.eup %226 }
 0x1cb   :  { %197 = vst.msk [vmem:[%s283_s5] sm:$0x3] %vm196_vm4, %v227_v16 }

// kernel: _lambda_.17
= control target key start
LH: loop header
LB: loop body
LE: loop exit
PB: predicated region body
PF: predicated region fallthrough
CT: control target
= control target key end

     0   :  { %11 = vsyncpa [#allocation3], 0  ;;  %s853_s21 = smov 0   ;;  %s855_s22 = smov 0   ;;  %s932_s0 = inlined_call_operand.vmem [shape: f32[2,8,64], index: 0, kind: input, shape index: {}]   ;;  %s933_s1 = inlined_call_operand.vmem [shape: bf16[2,64,64], index: 1, kind: input, shape index: {}]   ;;  %s934_s2 = inlined_call_operand.vmem [shape: f32[2,8,1], index: 2, kind: input, shape index: {}]   ;;  %s935_s3 = inlined_call_operand.vmem [shape: f32[2,8,1], index: 3, kind: input, shape index: {}]   ;;  %s936_s4 = inlined_call_operand.vmem [shape: f32[2,8,1], index: 4, kind: input, shape index: {}]   ;;  %s937_s5 = inlined_call_operand.vmem [shape: f32[2], index: 5, kind: input, shape index: {}]   ;;  %s938_s6 = inlined_call_operand.vmem [shape: f32[2,8,64], index: 6, kind: output, shape index: {}]  }
   0x1   :  { %s857_s23 = smov 0  }
   0x2 LB: > { %s688_s24 = sadd.s32 4294967295, %s812_s23   ;;  %s36_s25 = sadd.s32 1, %s808_s22  ;;  %s812_s23 = sphi %s857_s23, %s17_s23   ;;  %s808_s22 = sphi %s855_s22, %s942_s22   ;;  %s804_s21 = sphi %s853_s21, %s941_s21  }
   0x3   : > { %p38_p0 = scmp.ge.s32.totalorder %s36_s25, 2  ;;  %p690_p1 = scmp.ge.s32.totalorder %s812_s23, 1 }
   0x4   : > { %p232_p2 = scmp.lt.s32.totalorder %s812_s23, 3  ;;  %p878_p4 = scmp.eq.s32.totalorder %s688_s24, 0 }
   0x5   : > { %s944_s25 = smov (%p38_p0, %s36_s25), 0  ;;  %s245_s30 = sshll.u32 %s937_s5, 4  ;;  %s246_s30 = int_to_ptr.vmem [resolvable:$true] %s245_s30 }
   0x6   : > { %p874_p3 = pnand %p690_p1, %p232_p2  ;;  %s771_s7 = scalar_lea.vmem %s246_s30, 16 }
   0x7   : > { %p772_p7 = scmp.ne.s32.totalorder %s246_s30, %s771_s7  ;;  %p779_p11 = scmp.lt.s32.totalorder %s246_s30, %s246_s30 }
   0x8   : > { %p731_p5 = pneg %p874_p3  ;;  %p780_p12 = scmp.lt.s32.totalorder %s771_s7, %s771_s7 }
   0xa   : > { %p732_p6 = pnand %p878_p4, %p731_p5  ;;  %p781_p13 = por %p780_p12, %p779_p11 }
   0xc   : > { %p773_p8 = pneg %p732_p6 }
   0xe   : > { %p774_p9 = pnand %p773_p8, %p772_p7 }
  0x10   : > { %p775_p10 = pneg %p774_p9 }
  0x12   : > { %p782_p0 = pnand %p781_p13, %p775_p10 }
  0x14   : > { %785 = shalt.err (!%p782_p0)
}
  0x15   : > { %s814_s8 = smov [#allocation2]   ;;  %309 = sbr.rel (%p874_p3) target bundleno = 391 (0x187), region = 44 }
  0x16   : > { %734 = dma.vmem_to_smem (!%p732_p6), %s246_s30, 16, %s814_s8, [#allocation3]  }
  0x1c   : > { %799 = dma.done.wait (%p878_p4), [#allocation3], 16  }
  0x1d   : > { %801 = vsyncadd (%p878_p4), [#allocation3], 4294967280 }
  0x1e   : > { %315 = sfence }
  0x1f   : > { %p376_p1 = scmp.lt.s32.totalorder %s804_s21, 1  ;;  %v815_v0 = vmov 0   ;;  %v816_v1 = vmov 0.0   ;;  %vm817_vm0 = vmmov 0   ;;  %vm473_vm1 = vcmask 523264   ;;  %s447_s7 = sld [smem:[#allocation2 + %s804_s21]] }
  0x20   : > { %765 = vset.pattern.permute.xlu0 %v815_v0  ;;  %715 = vmatprep.subr.bf16.mxu0 %v816_v1 }
  0x21   : > { %s377_s9 = scalar_select %p376_p1, %s804_s21, 1  ;;  %766 = vset.pattern.permute.xlu1 %v815_v0  ;;  %723 = vmatprep.mubr.msk.bf16.mxu0 %vm817_vm0, %v816_v1 }
  0x23   : > { %s897_s10 = sshll.u32 %s377_s9, 3  ;;  %s709_s11 = sshll.u32 %s377_s9, 5 }
  0x24   : > { %s390_s14 = scalar_lea.vmem %s933_s1, %s709_s11  ;;  %s397_s17 = scalar_lea.vmem %s934_s2, %s897_s10 }
  0x25   : > { %v432_v2 = vld [vmem:[%s397_s17] sm:$0xff]  ;;  %s404_s20 = scalar_lea.vmem %s935_s3, %s897_s10  ;;  %v768_v5 = vld [vmem:[%s390_s14 + $0x8] sm:$0xff]   ;;  %v769_v6 = vld [vmem:[%s390_s14 + $0x10] sm:$0xff]   ;;  %s411_s27 = scalar_lea.vmem %s936_s4, %s897_s10  ;;  %v448_v15 = vstv %s447_s7 }
  0x26   : > { %435 = vperm.xlu0 %765, %v432_v2   ;;  %v767_v3 = vld [vmem:[%s390_s14] sm:$0xff]   ;;  %v770_v8 = vld [vmem:[%s390_s14 + $0x18] sm:$0xff]   ;;  %s382_s30 = scalar_lea.vmem %s932_s0, %s897_s10  ;;  %s421_s11 = scalar_lea.vmem %s938_s6, %s897_s10 }
  0x27   : > { %v439_v4 = vld [vmem:[%s404_s20] sm:$0xff]  ;;  %716 = vmatpush3.bf16.msra.mxu0 %v767_v3 }
  0x28   : > { %717 = vmatprep.subr.bf16.mxu0 %v816_v1  ;;  %v517_v7 = vld [vmem:[%s411_s27] sm:$0xff] }
  0x29   : > { %520 = vperm.xlu1 %766, %v517_v7   ;;  %v431_v10 = vld [vmem:[%s382_s30] sm:$0xff] }
  0x2a   : > { %442 = vperm.xlu0 %765, %v439_v4  }
  0x2b   : > { %718 = vmatpush3.bf16.msra.mxu0 %v768_v5 }
  0x2c   : > { %719 = vmatprep.subr.bf16.mxu0 %v816_v1 }
  0x2f   : > { %720 = vmatpush3.bf16.msra.mxu0 %v769_v6 }
  0x30   : > { %721 = vmatprep.subr.bf16.mxu0 %v816_v1 }
  0x33   : > { %722 = vmatpush3.bf16.msra.mxu0 %v770_v8 }
  0xa5   : > { %v436_v9 = vpop.permute.xlu0 %435 }
  0xa6   : > { %v438_v11 = vmul.f32 %v436_v9, %v431_v10 }
  0xa8   : > { %v521_v17 = vpop.permute.xlu1 %520 }
  0xa9   : > { %v443_v12 = vpop.permute.xlu0 %442 }
  0xaa   : > { %v445_v13 = vadd.f32 %v443_v12, %v438_v11 }
  0xac   : > { %v446_v14 = vpack.c.bf16 %v445_v13, %v445_v13 }
  0xae   : > { %724 = vmatmul.mubr.msk.bf16.vlgmr.msra.gmra.mrb[0].mxu0 %vm473_vm1, %v446_v14 }
 0x181   : > { %v511_v16 = vpop.f32.mrb[0].mxu0 }
 0x182   : > { %v512_v18 = vadd.f32 %v511_v16, %v448_v15  ;;  %v725_v19 = vpop.f32.mrb[1].mxu0 }
 0x183   : > { %v514_v20 = vpop.f32.mrb[2].mxu0 }
 0x184   : > { %v523_v21 = vmul.f32 %v521_v17, %v512_v18  ;;  %v726_v22 = vpop.f32.mrb[3].mxu0 }
 0x186   : > { %524 = vst.msk [vmem:[%s421_s11] sm:$0xff] %vm473_vm1, %v523_v21 }
 0x187 PF: > { %s17_s23 = sadd.s32 1, %s812_s23   ;;  %s941_s21 = smov %s808_s22 }
 0x188   : > { %p14_p2 = scmp.ge.s32.totalorder %s17_s23, 4   ;;  %s942_s22 = smov %s944_s25 }
 0x18a   :  { %16 = sbr.rel (!%p14_p2) target bundleno = 2 (0x2), region = 91 }
 0x191   :  { %556 = vsyncpa [#allocation3], 1 }
 0x192   :  { %558 = vsyncpa [#allocation3 + $0x1], 1 }

// kernel: _lambda_.18
= control target key start
LH: loop header
LB: loop body
LE: loop exit
PB: predicated region body
PF: predicated region fallthrough
CT: control target
= control target key end

     0   :  { %s639_s12 = smov 0   ;;  %s641_s13 = smov 0   ;;  %s696_s0 = inlined_call_operand.vmem [shape: f32[2,8,64], index: 0, kind: input, shape index: {}]   ;;  %s697_s1 = inlined_call_operand.vmem [shape: bf16[32,8], index: 1, kind: input, shape index: {}]   ;;  %s698_s2 = inlined_call_operand.vmem [shape: f32[32,1], index: 2, kind: input, shape index: {}]   ;;  %s699_s3 = inlined_call_operand.vmem [shape: f32[2,32,64], index: 3, kind: output, shape index: {}]  }
   0x1   :  { %s643_s14 = smov 0  }
   0x2 LB: > { %s25_s15 = sadd.s32 1, %s612_s13  ;;  %p536_p0 = scmp.ge.s32.totalorder %s616_s14, 1  ;;  %s616_s14 = sphi %s643_s14, %s13_s14   ;;  %s612_s13 = sphi %s641_s13, %s701_s13   ;;  %s608_s12 = sphi %s639_s12, %s700_s12  }
   0x3   : > { %p26_p1 = scmp.ge.s32.totalorder %s25_s15, 2  ;;  %p186_p2 = scmp.lt.s32.totalorder %s616_s14, 3 }
   0x5   : > { %s703_s15 = smov (%p26_p1, %s25_s15), 0  ;;  %p187_p3 = pnand %p536_p0, %p186_p2 }
   0x6   : > { %p229_p4 = scmp.lt.s32.totalorder (!%p187_p3), %s608_s12, 1  ;;  %v584_v0 = vld [vmem:[%s697_s1] sm:$0xff] (!%p187_p3)   ;;  %vm302_vm0 = vcmask (!%p187_p3), 64512   ;;  %v270_v1 = vld [vmem:[%s698_s2 + $0x10] sm:$0xff] (!%p187_p3)  ;;  %v618_v3 = vmov (!%p187_p3), 0   ;;  %v271_v4 = vld [vmem:[%s698_s2 + $0x18] sm:$0xff] (!%p187_p3) }
   0x7   : > { %190 = sbr.rel (%p187_p3) target bundleno = 269 (0x10d), region = 32  ;;  %v268_v2 = vld [vmem:[%s698_s2] sm:$0xff] (!%p187_p3)  ;;  %552 = vmatprep.mubr.msk.bf16.mxu0 (!%p187_p3), %vm302_vm0, %v584_v0  ;;  %583 = vset.pattern.permute.xlu1 (!%p187_p3), %v618_v3  ;;  %vm309_vm1 = vcmask (!%p187_p3), 1043456   ;;  %v269_v6 = vld [vmem:[%s698_s2 + $0x8] sm:$0xff] (!%p187_p3)  ;;  %vm398_vm2 = vcmask (!%p187_p3), 523264  }
   0x8   : > { %582 = vset.pattern.permute.xlu0 (!%p187_p3), %v618_v3  ;;  %284 = vperm.xlu1 (!%p187_p3), %583, %v270_v1   ;;  %v585_v9 = vld [vmem:[%s697_s1 + $0x8] sm:$0xff] (!%p187_p3)  }
   0x9   : > { %274 = vperm.xlu0 (!%p187_p3), %582, %v268_v2  }
   0xc   : > { %289 = vperm.xlu1 (!%p187_p3), %583, %v271_v4  }
   0xd   : > { %279 = vperm.xlu0 (!%p187_p3), %582, %v269_v6  }
   0xe   : > { %s705_s12 = smov (!%p229_p4, %s608_s12), 1 }
   0xf   : > { %s537_s22 = sshll.u32 %s705_s12, 3  ;;  %s546_s5 = sshll.u32 %s705_s12, 5 }
  0x10   : > { %s235_s25 = scalar_lea.vmem %s696_s0, %s537_s22  ;;  %s259_s8 = scalar_lea.vmem %s699_s3, %s546_s5 }
  0x11   : > { %v266_v5 = vld [vmem:[%s235_s25] sm:$0xff] }
  0x12   : > { %v267_v7 = vpack.c.bf16 %v266_v5, %v266_v5 }
  0x14   : > { %556 = vmatprep.subr.msk.bf16.mxu0 %vm309_vm1, %v267_v7  ;;  %v311_v8 = vsel %vm309_vm1, %v267_v7, 0 }
  0x15   : > { %551 = vmatpush3.bf16.msra.mxu0 %v311_v8 }
  0x18   : > { %553 = vmatmul.mubr.msk.bf16.vlgmr.msra.gmra.mrb[0].mxu0 %vm302_vm0, %v585_v9 }
  0x87   : > { %v285_v10 = vpop.permute.xlu1 %284 }
  0x88   : > { %v275_v11 = vpop.permute.xlu0 %274 }
  0x8b   : > { %v290_v15 = vpop.permute.xlu1 %289 }
  0x8c   : > { %v280_v18 = vpop.permute.xlu0 %279 }
  0xeb   : > { %v554_v12 = vpop.f32.mrb[0].mxu0 }
  0xec   : > { %v356_v13 = vadd.f32 %v554_v12, %v285_v10  ;;  %v347_v14 = vpop.f32.mrb[1].mxu0 }
  0xed   : > { %v348_v16 = vadd.f32 %v347_v14, %v275_v11  ;;  %v555_v17 = vpop.f32.mrb[2].mxu0 }
  0xee   : > { %v364_v19 = vmul.f32 %v356_v13, %v356_v13  ;;  %v359_v20 = vadd.f32 %v555_v17, %v290_v15  ;;  %v350_v21 = vpop.f32.mrb[3].mxu0 }
  0xef   : > { %v362_v22 = vmul.f32 %v348_v16, %v348_v16  ;;  %v351_v23 = vadd.f32 %v350_v21, %v280_v18 }
  0xf0   : > { %v368_v24 = vmul.f32 %v364_v19, %v356_v13  ;;  %v365_v25 = vmul.f32 %v359_v20, %v359_v20 }
  0xf1   : > { %v366_v26 = vmul.f32 %v362_v22, %v348_v16  ;;  %v363_v27 = vmul.f32 %v351_v23, %v351_v23 }
  0xf2   : > { %v372_v28 = vmul.f32 0.044715, %v368_v24  ;;  %v369_v29 = vmul.f32 %v365_v25, %v359_v20 }
  0xf3   : > { %v370_v30 = vmul.f32 0.044715, %v366_v26  ;;  %v367_v31 = vmul.f32 %v363_v27, %v351_v23 }
  0xf4   : > { %v376_v32 = vadd.f32 %v372_v28, %v356_v13  ;;  %v373_v33 = vmul.f32 0.044715, %v369_v29 }
  0xf5   : > { %v374_v34 = vadd.f32 %v370_v30, %v348_v16  ;;  %v371_v35 = vmul.f32 0.044715, %v367_v31 }
  0xf6   : > { %v380_v36 = vmul.f32 0.7978846, %v376_v32  ;;  %v377_v37 = vadd.f32 %v373_v33, %v359_v20 }
  0xf7   : > { %v378_v38 = vmul.f32 0.7978846, %v374_v34  ;;  %v375_v39 = vadd.f32 %v371_v35, %v351_v23 }
  0xf8   : > { %586 = vtanh.f32 %v380_v36  ;;  %v381_v40 = vmul.f32 0.7978846, %v377_v37 }
  0xf9   : > { %588 = vtanh.f32 %v378_v38  ;;  %v379_v41 = vmul.f32 0.7978846, %v375_v39 }
  0xfa   : > { %590 = vtanh.f32 %v381_v40 }
  0xfb   : > { %592 = vtanh.f32 %v379_v41 }
 0x102   : > { %v587_v42 = vpop.eup %586 }
 0x103   : > { %v589_v43 = vpop.eup %588  ;;  %v388_v44 = vadd.f32 1.0, %v587_v42 }
 0x104   : > { %v591_v45 = vpop.eup %590  ;;  %v386_v46 = vadd.f32 1.0, %v589_v43 }
 0x105   : > { %v593_v47 = vpop.eup %592  ;;  %v392_v48 = vmul.f32 0.5, %v388_v44  ;;  %v389_v49 = vadd.f32 1.0, %v591_v45 }
 0x106   : > { %v390_v50 = vmul.f32 0.5, %v386_v46  ;;  %v387_v51 = vadd.f32 1.0, %v593_v47 }
 0x107   : > { %v396_v52 = vmul.f32 %v392_v48, %v356_v13  ;;  %v393_v53 = vmul.f32 0.5, %v389_v49 }
 0x108   : > { %v394_v54 = vmul.f32 %v390_v50, %v348_v16  ;;  %v391_v55 = vmul.f32 0.5, %v387_v51 }
 0x109   : > { %401 = vst.msk [vmem:[%s259_s8 + $0x10] sm:$0xff] %vm398_vm2, %v396_v52  ;;  %v397_v56 = vmul.f32 %v393_v53, %v359_v20 }
 0x10a   : > { %399 = vst.msk [vmem:[%s259_s8] sm:$0xff] %vm398_vm2, %v394_v54  ;;  %v395_v57 = vmul.f32 %v391_v55, %v351_v23 }
 0x10b   : > { %402 = vst.msk [vmem:[%s259_s8 + $0x18] sm:$0xff] %vm398_vm2, %v397_v56 }
 0x10c   : > { %400 = vst.msk [vmem:[%s259_s8 + $0x8] sm:$0xff] %vm398_vm2, %v395_v57 }
 0x10d PF: > { %s13_s14 = sadd.s32 1, %s616_s14   ;;  %s700_s12 = smov %s612_s13 }
 0x10e   : > { %p10_p5 = scmp.ge.s32.totalorder %s13_s14, 4   ;;  %s701_s13 = smov %s703_s15 }
 0x110   :  { %12 = sbr.rel (!%p10_p5) target bundleno = 2 (0x2), region = 68 }

// kernel: _lambda_.19
= control target key start
LH: loop header
LB: loop body
LE: loop exit
PB: predicated region body
PF: predicated region fallthrough
CT: control target
= control target key end

     0   :  { %s622_s15 = smov 0   ;;  %s624_s16 = smov 0   ;;  %s664_s0 = inlined_call_operand.vmem [shape: f32[2,32,64], index: 0, kind: input, shape index: {}]   ;;  %s665_s1 = inlined_call_operand.vmem [shape: bf16[8,32], index: 1, kind: input, shape index: {}]   ;;  %s666_s2 = inlined_call_operand.vmem [shape: f32[8,1], index: 2, kind: input, shape index: {}]   ;;  %s667_s3 = inlined_call_operand.vmem [shape: f32[2,8,64], index: 3, kind: input, shape index: {}]   ;;  %s668_s4 = inlined_call_operand.vmem [shape: f32[2,8,64], index: 4, kind: output, shape index: {}]  }
   0x1   :  { %s626_s17 = smov 0  }
   0x2 LB: > { %s26_s18 = sadd.s32 1, %s588_s16  ;;  %p522_p0 = scmp.ge.s32.totalorder %s592_s17, 1  ;;  %s592_s17 = sphi %s626_s17, %s14_s17   ;;  %s588_s16 = sphi %s624_s16, %s670_s16   ;;  %s584_s15 = sphi %s622_s15, %s669_s15  }
   0x3   : > { %p27_p1 = scmp.ge.s32.totalorder %s26_s18, 2  ;;  %p227_p2 = scmp.lt.s32.totalorder %s592_s17, 3 }
   0x5   : > { %s672_s18 = smov (%p27_p1, %s26_s18), 0  ;;  %p228_p3 = pnand %p522_p0, %p227_p2 }
   0x6   : > { %p279_p4 = scmp.lt.s32.totalorder (!%p228_p3), %s584_s15, 1  ;;  %v594_v0 = vmov (!%p228_p3), 0.0   ;;  %vm595_vm0 = vmmov (!%p228_p3), 0   ;;  %v323_v1 = vld [vmem:[%s666_s2] sm:$0xff] (!%p228_p3)  ;;  %v596_v2 = vmov (!%p228_p3), 0   ;;  %vm329_vm1 = vcmask (!%p228_p3), 261120  }
   0x7   : > { %231 = sbr.rel (%p228_p3) target bundleno = 244 (0xf4), region = 36  ;;  %534 = vmatprep.subr.bf16.mxu0 (!%p228_p3), %v594_v0  ;;  %538 = vmatprep.mubr.msk.bf16.mxu0 (!%p228_p3), %vm595_vm0, %v594_v0  ;;  %v316_v9 = vld [vmem:[%s665_s1] sm:$0xf] (!%p228_p3)  ;;  %vm375_vm2 = vcmask (!%p228_p3), 523264  }
   0x8   : > { %569 = vset.pattern.permute.xlu0 (!%p228_p3), %v596_v2 }
   0x9   : > { %326 = vperm.xlu0 (!%p228_p3), %569, %v323_v1  }
   0xe   : > { %s674_s15 = smov (!%p279_p4, %s584_s15), 1 }
   0xf   : > { %s530_s21 = sshll.u32 %s674_s15, 5  ;;  %s525_s27 = sshll.u32 %s674_s15, 3 }
  0x10   : > { %s286_s24 = scalar_lea.vmem %s664_s0, %s530_s21  ;;  %s304_s30 = scalar_lea.vmem %s667_s3, %s525_s27 }
  0x11   : > { %v317_v3 = vld [vmem:[%s286_s24] sm:$0xff]  ;;  %v318_v4 = vld [vmem:[%s286_s24 + $0x8] sm:$0xff]  ;;  %v319_v5 = vld [vmem:[%s286_s24 + $0x10] sm:$0xff]  ;;  %s314_s7 = scalar_lea.vmem %s668_s4, %s525_s27 }
  0x12   : > { %v321_v6 = vpack.c.bf16 %v318_v4, %v317_v3  ;;  %v320_v7 = vld [vmem:[%s286_s24 + $0x18] sm:$0xff]  ;;  %v373_v12 = vld [vmem:[%s304_s30] sm:$0xff] }
  0x13   : > { %v322_v8 = vpack.c.bf16 %v320_v7, %v319_v5 }
  0x14   : > { %535 = vmatpush3.bf16.msra.mxu0 %v321_v6 }
  0x15   : > { %536 = vmatprep.subr.bf16.mxu0 %v594_v0 }
  0x18   : > { %537 = vmatpush3.bf16.msra.mxu0 %v322_v8 }
  0x1b   : > { %539 = vmatmul.mubr.msk.bf16.vlgmr.msra.gmra.mrb[0].mxu0 %vm329_vm1, %v316_v9 }
  0x88   : > { %v327_v10 = vpop.permute.xlu0 %326 }
  0xee   : > { %v367_v11 = vpop.f32.mrb[0].mxu0 }
  0xef   : > { %v368_v13 = vadd.f32 %v367_v11, %v327_v10  ;;  %v540_v14 = vpop.f32.mrb[1].mxu0 }
  0xf0   : > { %v370_v15 = vpop.f32.mrb[2].mxu0 }
  0xf1   : > { %v374_v16 = vadd.f32 %v373_v12, %v368_v13  ;;  %v541_v17 = vpop.f32.mrb[3].mxu0 }
  0xf3   : > { %376 = vst.msk [vmem:[%s314_s7] sm:$0xff] %vm375_vm2, %v374_v16 }
  0xf4 PF: > { %s14_s17 = sadd.s32 1, %s592_s17   ;;  %s669_s15 = smov %s588_s16 }
  0xf5   : > { %p11_p5 = scmp.ge.s32.totalorder %s14_s17, 4   ;;  %s670_s16 = smov %s672_s18 }
  0xf7   :  { %13 = sbr.rel (!%p11_p5) target bundleno = 2 (0x2), region = 75 }

// kernel: _lambda_.20
= control target key start
LH: loop header
LB: loop body
LE: loop exit
PB: predicated region body
PF: predicated region fallthrough
CT: control target
= control target key end

     0   :  { %s574_s12 = smov 0   ;;  %s576_s13 = smov 0   ;;  %s616_s0 = inlined_call_operand.vmem [shape: f32[2,32,16], index: 0, kind: input, shape index: {}]   ;;  %s617_s1 = inlined_call_operand.vmem [shape: bf16[16,32], index: 1, kind: input, shape index: {}]   ;;  %s618_s2 = inlined_call_operand.vmem [shape: f32[16,1], index: 2, kind: input, shape index: {}]   ;;  %s619_s3 = inlined_call_operand.vmem [shape: f32[2,16,16], index: 3, kind: output, shape index: {}]  }
   0x1   :  { %s578_s14 = smov 0  }
   0x2 LB: > { %s25_s15 = sadd.s32 1, %s545_s13  ;;  %p476_p0 = scmp.ge.s32.totalorder %s549_s14, 1  ;;  %s549_s14 = sphi %s578_s14, %s13_s14   ;;  %s545_s13 = sphi %s576_s13, %s621_s13   ;;  %s541_s12 = sphi %s574_s12, %s620_s12  }
   0x3   : > { %p26_p1 = scmp.ge.s32.totalorder %s25_s15, 2  ;;  %p187_p2 = scmp.lt.s32.totalorder %s549_s14, 3 }
   0x5   : > { %s623_s15 = smov (%p26_p1, %s25_s15), 0  ;;  %p188_p3 = pnand %p476_p0, %p187_p2 }
   0x6   : > { %p231_p4 = scmp.lt.s32.totalorder (!%p188_p3), %s541_s12, 1  ;;  %v551_v0 = vmov (!%p188_p3), 0.0   ;;  %vm552_vm0 = vmmov (!%p188_p3), 0   ;;  %v273_v1 = vld [vmem:[%s618_s2] sm:$0xff] (!%p188_p3)  ;;  %v553_v2 = vmov (!%p188_p3), 0   ;;  %v274_v3 = vld [vmem:[%s618_s2 + $0x8] sm:$0xff] (!%p188_p3) }
   0x7   : > { %191 = sbr.rel (%p188_p3) target bundleno = 246 (0xf6), region = 32  ;;  %490 = vmatprep.subr.bf16.mxu0 (!%p188_p3), %v551_v0  ;;  %494 = vmatprep.mubr.msk.bf16.mxu0 (!%p188_p3), %vm552_vm0, %v551_v0  ;;  %v526_v10 = vld [vmem:[%s617_s1] sm:$0xff] (!%p188_p3)   ;;  %vm290_vm1 = vcmask (!%p188_p3), 261120   ;;  %vm337_vm2 = vcmask (!%p188_p3), 130048  }
   0x8   : > { %525 = vset.pattern.permute.xlu0 (!%p188_p3), %v553_v2 }
   0x9   : > { %277 = vperm.xlu0 (!%p188_p3), %525, %v273_v1  }
   0xd   : > { %282 = vperm.xlu0 (!%p188_p3), %525, %v274_v3  }
   0xe   : > { %s625_s12 = smov (!%p231_p4, %s541_s12), 1 }
   0xf   : > { %s485_s18 = sshll.u32 %s625_s12, 5  ;;  %s486_s26 = sshll.u32 %s625_s12, 4 }
  0x10   : > { %s238_s23 = scalar_lea.vmem %s616_s0, %s485_s18  ;;  %s262_s29 = scalar_lea.vmem %s619_s3, %s486_s26 }
  0x11   : > { %v267_v4 = vld [vmem:[%s238_s23] sm:$0xff]  ;;  %v268_v5 = vld [vmem:[%s238_s23 + $0x8] sm:$0xff]  ;;  %v269_v6 = vld [vmem:[%s238_s23 + $0x10] sm:$0xff] }
  0x12   : > { %v271_v7 = vpack.c.bf16 %v268_v5, %v267_v4  ;;  %v270_v8 = vld [vmem:[%s238_s23 + $0x18] sm:$0xff] }
  0x13   : > { %v272_v9 = vpack.c.bf16 %v270_v8, %v269_v6 }
  0x14   : > { %491 = vmatpush3.bf16.msra.mxu0 %v271_v7 }
  0x15   : > { %492 = vmatprep.subr.bf16.mxu0 %v551_v0 }
  0x18   : > { %493 = vmatpush3.bf16.msra.mxu0 %v272_v9 }
  0x1b   : > { %495 = vmatmul.mubr.msk.bf16.vlgmr.msra.gmra.mrb[0].mxu0 %vm290_vm1, %v526_v10 }
  0x88   : > { %v278_v11 = vpop.permute.xlu0 %277 }
  0x8c   : > { %v283_v15 = vpop.permute.xlu0 %282 }
  0xee   : > { %v328_v12 = vpop.f32.mrb[0].mxu0 }
  0xef   : > { %v329_v13 = vadd.f32 %v328_v12, %v278_v11  ;;  %v496_v14 = vpop.f32.mrb[1].mxu0 }
  0xf0   : > { %v331_v16 = vpop.f32.mrb[2].mxu0 }
  0xf1   : > { %v335_v17 = vmax.f32 %v329_v13, 0.0  ;;  %v332_v18 = vadd.f32 %v331_v16, %v283_v15  ;;  %v497_v19 = vpop.f32.mrb[3].mxu0 }
  0xf3   : > { %338 = vst.msk [vmem:[%s262_s29] sm:$0xff] %vm337_vm2, %v335_v17  ;;  %v336_v20 = vmax.f32 %v332_v18, 0.0 }
  0xf5   : > { %339 = vst.msk [vmem:[%s262_s29 + $0x8] sm:$0xff] %vm337_vm2, %v336_v20 }
  0xf6 PF: > { %s13_s14 = sadd.s32 1, %s549_s14   ;;  %s620_s12 = smov %s545_s13 }
  0xf7   : > { %p10_p5 = scmp.ge.s32.totalorder %s13_s14, 4   ;;  %s621_s13 = smov %s623_s15 }
  0xf9   :  { %12 = sbr.rel (!%p10_p5) target bundleno = 2 (0x2), region = 68 }

// kernel: _lambda_.21
= control target key start
LH: loop header
LB: loop body
LE: loop exit
PB: predicated region body
PF: predicated region fallthrough
CT: control target
= control target key end

     0   :  { %vm25_vm0 = vcmask 130048   ;;  %vm12_vm1 = vcmask 7168   ;;  %v67_v3 = vmov 0.0   ;;  %s166_s0 = inlined_call_operand.vmem [shape: f32[32,16], index: 0, kind: input, shape index: {}]   ;;  %s167_s1 = inlined_call_operand.vmem [shape: f32[32,1], index: 1, kind: output, shape index: {}]  }
   0x1   :  { %v23_v0 = vld [vmem:[%s166_s0 + $0x10] sm:$0xff]  ;;  %v21_v1 = vld [vmem:[%s166_s0] sm:$0xff]  ;;  %v24_v2 = vld [vmem:[%s166_s0 + $0x18] sm:$0xff]  ;;  %15 = vst.msk [vmem:[%s167_s1 + $0x10] sm:$0xff] %vm12_vm1, %v67_v3 }
   0x2   :  { %13 = vst.msk [vmem:[%s167_s1] sm:$0xff] %vm12_vm1, %v67_v3  ;;  %14 = vst.msk [vmem:[%s167_s1 + $0x8] sm:$0xff] %vm12_vm1, %v67_v3  ;;  %v32_v4 = vsel %vm25_vm0, %v23_v0, 0.0  ;;  %v26_v5 = vsel %vm25_vm0, %v21_v1, 0.0  ;;  %v22_v6 = vld [vmem:[%s166_s0 + $0x8] sm:$0xff]  ;;  %v35_v7 = vsel %vm25_vm0, %v24_v2, 0.0 }
   0x3   :  { %16 = vst.msk [vmem:[%s167_s1 + $0x18] sm:$0xff] %vm12_vm1, %v67_v3  ;;  %33 = vadd.xlane.f32.xlu1 %v32_v4  ;;  %27 = vadd.xlane.f32.xlu0 %v26_v5  ;;  %v29_v8 = vsel %vm25_vm0, %v22_v6, 0.0 }
   0x7   :  { %36 = vadd.xlane.f32.xlu1 %v35_v7  ;;  %30 = vadd.xlane.f32.xlu0 %v29_v8 }
   0x8   :  { %v19_v9 = vld [vmem:[%s167_s1 + $0x10] sm:$0xff] }
   0x9   :  { %v17_v10 = vld [vmem:[%s167_s1] sm:$0xff]  ;;  %v18_v16 = vld [vmem:[%s167_s1 + $0x8] sm:$0xff] }
   0xa   :  { %v20_v15 = vld [vmem:[%s167_s1 + $0x18] sm:$0xff] }
  0x90   :  { %v34_v11 = vpop.xlane.xlu1 %33  ;;  %v28_v12 = vpop.xlane.xlu0 %27 }
  0x91   :  { %v40_v13 = vadd.f32 %v34_v11, %v19_v9  ;;  %v38_v14 = vadd.f32 %v28_v12, %v17_v10 }
  0x93   :  { %45 = vst.msk [vmem:[%s167_s1 + $0x10] sm:$0xff] %vm12_vm1, %v40_v13  ;;  %43 = vst.msk [vmem:[%s167_s1] sm:$0xff] %vm12_vm1, %v38_v14 }
  0x94   :  { %v37_v17 = vpop.xlane.xlu1 %36  ;;  %v31_v18 = vpop.xlane.xlu0 %30 }
  0x95   :  { %v41_v19 = vadd.f32 %v37_v17, %v20_v15  ;;  %v39_v20 = vadd.f32 %v31_v18, %v18_v16 }
  0x97   :  { %46 = vst.msk [vmem:[%s167_s1 + $0x18] sm:$0xff] %vm12_vm1, %v41_v19  ;;  %44 = vst.msk [vmem:[%s167_s1 + $0x8] sm:$0xff] %vm12_vm1, %v39_v20 }
  0x9a   :  { %v52_v21 = vld [vmem:[%s167_s1 + $0x10] sm:$0xff]  ;;  %v50_v22 = vld [vmem:[%s167_s1] sm:$0xff] }
  0x9b   :  { %v56_v23 = vmul.f32 0.0625, %v52_v21  ;;  %v54_v24 = vmul.f32 0.0625, %v50_v22 }
  0x9d   :  { %60 = vst.msk [vmem:[%s167_s1 + $0x10] sm:$0xff] %vm12_vm1, %v56_v23  ;;  %58 = vst.msk [vmem:[%s167_s1] sm:$0xff] %vm12_vm1, %v54_v24 }
  0x9e   :  { %v53_v25 = vld [vmem:[%s167_s1 + $0x18] sm:$0xff]  ;;  %v51_v26 = vld [vmem:[%s167_s1 + $0x8] sm:$0xff] }
  0x9f   :  { %v57_v27 = vmul.f32 0.0625, %v53_v25  ;;  %v55_v28 = vmul.f32 0.0625, %v51_v26 }
  0xa1   :  { %61 = vst.msk [vmem:[%s167_s1 + $0x18] sm:$0xff] %vm12_vm1, %v57_v27  ;;  %59 = vst.msk [vmem:[%s167_s1 + $0x8] sm:$0xff] %vm12_vm1, %v55_v28 }

// kernel: _lambda_.22
= control target key start
LH: loop header
LB: loop body
LE: loop exit
PB: predicated region body
PF: predicated region fallthrough
CT: control target
= control target key end

     0   :  { %v236_v0 = vmov 0.0|0.0   ;;  %vm237_vm0 = vmmov 0   ;;  %v238_v3 = vmov 0.0   ;;  %vm30_vm1 = vcmask 130048   ;;  %s290_s1 = inlined_call_operand.vmem [shape: f32[16,4], index: 1, kind: input, shape index: {}]   ;;  %s291_s0 = inlined_call_operand.vmem [shape: f32[2,16], index: 0, kind: input, shape index: {}]   ;;  %s292_s3 = inlined_call_operand.vmem [shape: f32[4,16], index: 3, kind: input, shape index: {}]   ;;  %s293_s2 = inlined_call_operand.vmem [shape: f32[1,4], index: 2, kind: input, shape index: {}]   ;;  %s294_s4 = inlined_call_operand.vmem [shape: f32[1,16], index: 4, kind: input, shape index: {}]   ;;  %s295_s5 = inlined_call_operand.vmem [shape: f32[2,16], index: 5, kind: output, shape index: {}]  }
   0x1   :  { %226 = vmatprep.subr.bf16.mxu0 %v236_v0  ;;  %v21_v1 = vld [vmem:[%s290_s1] sm:$0xff]  ;;  %v22_v2 = vld [vmem:[%s290_s1 + $0x8] sm:$0xff]  ;;  %218 = vmatprep.mubr.msk.f32.mxu0 %vm237_vm0, %v238_v3  ;;  %vm117_vm2 = vcmask 1043456   ;;  %vm113_vm3 = vcmask 31744   ;;  %vm197_vm4 = vcmask 123904  }
   0x2   :  { %v227_v4 = vpack.c.bf16 %v22_v2, %v21_v1  ;;  %221 = vmatprep.subr.mxu1 %v238_v3  ;;  %223 = vmatprep.mubr.msk.f32.mxu1 %vm237_vm0, %v238_v3  ;;  %v20_v5 = vld [vmem:[%s291_s0] sm:$0x3] }
   0x3   :  { %v105_v6 = vld [vmem:[%s292_s3] sm:$0xf] }
   0x4   :  { %228 = vmatpush3.bf16.msra.mxu0 %v227_v4  ;;  %222 = vmatpush3.msk.msra.mxu1 %vm117_vm2, %v105_v6  ;;  %v203_v7 = vld [vmem:[%s293_s2] ss:$0 sm:$0xff] }
   0x5   :  { %v205_v12 = vld [vmem:[%s294_s4] ss:$0 sm:$0xff] }
   0x7   :  { %219 = vmatmul.mubr.msk.f32.vlgmr.msra.gmra.mrb[0].mxu0 %vm30_vm1, %v20_v5 }
  0xda   :  { %v100_v8 = vpop.f32.mrb[0].mxu0 }
  0xdb   :  { %v101_v9 = vadd.f32 %v203_v7, %v100_v8  ;;  %v220_v10 = vpop.f32.mrb[1].mxu0 }
  0xdd   :  { %v104_v11 = vmax.f32 %v101_v9, 0.0 }
  0xdf   :  { %224 = vmatmul.mubr.msk.f32.vlgmr.msra.gmra.mrb[0].mxu1 %vm113_vm3, %v104_v11 }
 0x1b2   :  { %v187_v13 = vpop.f32.mrb[0].mxu1 }
 0x1b3   :  { %v188_v14 = vadd.f32 %v205_v12, %v187_v13  ;;  %v225_v15 = vpop.f32.mrb[1].mxu1 }
 0x1b5   :  { %v208_v16 = vmul.f32 -1.442695, %v188_v14 }
 0x1b7   :  { %232 = vpow2.f32 %v208_v16 }
 0x1c1   :  { %v233_v17 = vpop.eup %232 }
 0x1c2   :  { %v194_v18 = vadd.f32 1.0, %v233_v17 }
 0x1c4   :  { %234 = vrcp.f32 %v194_v18 }
 0x1ce   :  { %v235_v19 = vpop.eup %234 }
 0x1cf   :  { %198 = vst.msk [vmem:[%s295_s5] sm:$0x3] %vm197_vm4, %v235_v19 }

// kernel: _lambda_.23
= control target key start
LH: loop header
LB: loop body
LE: loop exit
PB: predicated region body
PF: predicated region fallthrough
CT: control target
= control target key end

     0   :  { %11 = vsyncpa [#allocation3], 0  ;;  %s814_s21 = smov 0   ;;  %s816_s22 = smov 0   ;;  %s894_s0 = inlined_call_operand.vmem [shape: f32[4,8,16], index: 0, kind: input, shape index: {}]   ;;  %s895_s1 = inlined_call_operand.vmem [shape: bf16[4,16,16], index: 1, kind: input, shape index: {}]   ;;  %s896_s2 = inlined_call_operand.vmem [shape: f32[4,8,1], index: 2, kind: input, shape index: {}]   ;;  %s897_s3 = inlined_call_operand.vmem [shape: f32[4,8,1], index: 3, kind: input, shape index: {}]   ;;  %s898_s4 = inlined_call_operand.vmem [shape: f32[4,8,1], index: 4, kind: input, shape index: {}]   ;;  %s899_s5 = inlined_call_operand.vmem [shape: f32[4], index: 5, kind: input, shape index: {}]   ;;  %s900_s6 = inlined_call_operand.vmem [shape: f32[4,8,16], index: 6, kind: output, shape index: {}]  }
   0x1   :  { %s818_s23 = smov 0  }
   0x2 LB: > { %s664_s24 = sadd.s32 4294967295, %s773_s23   ;;  %s36_s25 = sadd.s32 1, %s769_s22  ;;  %s773_s23 = sphi %s818_s23, %s17_s23   ;;  %s769_s22 = sphi %s816_s22, %s904_s22   ;;  %s765_s21 = sphi %s814_s21, %s903_s21  }
   0x3   : > { %p38_p0 = scmp.ge.s32.totalorder %s36_s25, 4  ;;  %p666_p1 = scmp.ge.s32.totalorder %s773_s23, 1 }
   0x4   : > { %p232_p2 = scmp.lt.s32.totalorder %s773_s23, 5  ;;  %p839_p4 = scmp.eq.s32.totalorder %s664_s24, 0 }
   0x5   : > { %s906_s25 = smov (%p38_p0, %s36_s25), 0  ;;  %s245_s30 = sshll.u32 %s899_s5, 4  ;;  %s246_s30 = int_to_ptr.vmem [resolvable:$true] %s245_s30 }
   0x6   : > { %p835_p3 = pnand %p666_p1, %p232_p2  ;;  %s732_s7 = scalar_lea.vmem %s246_s30, 16 }
   0x7   : > { %p733_p7 = scmp.ne.s32.totalorder %s246_s30, %s732_s7  ;;  %p740_p11 = scmp.lt.s32.totalorder %s246_s30, %s246_s30 }
   0x8   : > { %p695_p5 = pneg %p835_p3  ;;  %p741_p12 = scmp.lt.s32.totalorder %s732_s7, %s732_s7 }
   0xa   : > { %p696_p6 = pnand %p839_p4, %p695_p5  ;;  %p742_p13 = por %p741_p12, %p740_p11 }
   0xc   : > { %p734_p8 = pneg %p696_p6 }
   0xe   : > { %p735_p9 = pnand %p734_p8, %p733_p7 }
  0x10   : > { %p736_p10 = pneg %p735_p9 }
  0x12   : > { %p743_p0 = pnand %p742_p13, %p736_p10 }
  0x14   : > { %746 = shalt.err (!%p743_p0)
}
  0x15   : > { %s775_s8 = smov [#allocation2]   ;;  %309 = sbr.rel (%p835_p3) target bundleno = 391 (0x187), region = 44 }
  0x16   : > { %698 = dma.vmem_to_smem (!%p696_p6), %s246_s30, 16, %s775_s8, [#allocation3]  }
  0x1c   : > { %760 = dma.done.wait (%p839_p4), [#allocation3], 16  }
  0x1d   : > { %762 = vsyncadd (%p839_p4), [#allocation3], 4294967280 }
  0x1e   : > { %315 = sfence }
  0x1f   : > { %p376_p1 = scmp.lt.s32.totalorder %s765_s21, 3  ;;  %v776_v0 = vmov 0   ;;  %v777_v4 = vmov 0.0   ;;  %vm778_vm0 = vmmov 0   ;;  %vm449_vm1 = vcmask 130048   ;;  %s441_s30 = sld [smem:[#allocation2 + %s765_s21]] }
  0x20   : > { %729 = vset.pattern.permute.xlu0 %v776_v0  ;;  %730 = vset.pattern.permute.xlu1 %v776_v0 }
  0x21   : > { %s377_s9 = scalar_select %p376_p1, %s765_s21, 3  ;;  %685 = vmatprep.subr.bf16.mxu0 %v777_v4  ;;  %687 = vmatprep.mubr.msk.bf16.mxu0 %vm778_vm0, %v777_v4 }
  0x23   : > { %s858_s10 = sshll.u32 %s377_s9, 3 }
  0x24   : > { %s397_s13 = scalar_lea.vmem %s896_s2, %s858_s10  ;;  %s404_s16 = scalar_lea.vmem %s897_s3, %s858_s10 }
  0x25   : > { %v426_v1 = vld [vmem:[%s397_s13] sm:$0xff]  ;;  %s390_s19 = scalar_lea.vmem %s895_s1, %s858_s10  ;;  %s411_s26 = scalar_lea.vmem %s898_s4, %s858_s10  ;;  %v442_v12 = vstv %s441_s30 }
  0x26   : > { %429 = vperm.xlu0 %729, %v426_v1   ;;  %v433_v2 = vld [vmem:[%s404_s16] sm:$0xff]  ;;  %s382_s29 = scalar_lea.vmem %s894_s0, %s858_s10  ;;  %s421_s9 = scalar_lea.vmem %s900_s6, %s858_s10 }
  0x27   : > { %v731_v3 = vld [vmem:[%s390_s19] sm:$0xff]  }
  0x28   : > { %686 = vmatpush3.bf16.msra.mxu0 %v731_v3  ;;  %v493_v5 = vld [vmem:[%s411_s26] sm:$0xff] }
  0x29   : > { %496 = vperm.xlu1 %730, %v493_v5   ;;  %v425_v7 = vld [vmem:[%s382_s29] sm:$0xff] }
  0x2a   : > { %436 = vperm.xlu0 %729, %v433_v2  }
  0xa5   : > { %v430_v6 = vpop.permute.xlu0 %429 }
  0xa6   : > { %v432_v8 = vmul.f32 %v430_v6, %v425_v7 }
  0xa8   : > { %v497_v14 = vpop.permute.xlu1 %496 }
  0xa9   : > { %v437_v9 = vpop.permute.xlu0 %436 }
  0xaa   : > { %v439_v10 = vadd.f32 %v437_v9, %v432_v8 }
  0xac   : > { %v440_v11 = vpack.c.bf16 %v439_v10, %v439_v10 }
  0xae   : > { %688 = vmatmul.mubr.msk.bf16.vlgmr.msra.gmra.mrb[0].mxu0 %vm449_vm1, %v440_v11 }
 0x181   : > { %v487_v13 = vpop.f32.mrb[0].mxu0 }
 0x182   : > { %v488_v15 = vadd.f32 %v487_v13, %v442_v12  ;;  %v689_v16 = vpop.f32.mrb[1].mxu0 }
 0x183   : > { %v490_v17 = vpop.f32.mrb[2].mxu0 }
 0x184   : > { %v499_v18 = vmul.f32 %v497_v14, %v488_v15  ;;  %v690_v19 = vpop.f32.mrb[3].mxu0 }
 0x186   : > { %500 = vst.msk [vmem:[%s421_s9] sm:$0xff] %vm449_vm1, %v499_v18 }
 0x187 PF: > { %s17_s23 = sadd.s32 1, %s773_s23   ;;  %s903_s21 = smov %s769_s22 }
 0x188   : > { %p14_p2 = scmp.ge.s32.totalorder %s17_s23, 6   ;;  %s904_s22 = smov %s906_s25 }
 0x18a   :  { %16 = sbr.rel (!%p14_p2) target bundleno = 2 (0x2), region = 91 }
 0x191   :  { %532 = vsyncpa [#allocation3], 1 }
 0x192   :  { %534 = vsyncpa [#allocation3 + $0x1], 1 }

// kernel: _lambda_.25
= control target key start
LH: loop header
LB: loop body
LE: loop exit
PB: predicated region body
PF: predicated region fallthrough
CT: control target
= control target key end

     0   :  { %s691_s15 = smov 0   ;;  %s693_s16 = smov 0   ;;  %s740_s0 = inlined_call_operand.vmem [shape: f32[2,64,16], index: 0, kind: input, shape index: {}]   ;;  %s741_s1 = inlined_call_operand.vmem [shape: bf16[16,64], index: 1, kind: input, shape index: {}]   ;;  %s742_s2 = inlined_call_operand.vmem [shape: f32[16,1], index: 2, kind: input, shape index: {}]   ;;  %s743_s3 = inlined_call_operand.vmem [shape: f32[2,16,16], index: 3, kind: input, shape index: {}]   ;;  %s744_s4 = inlined_call_operand.vmem [shape: f32[2,16,16], index: 4, kind: output, shape index: {}]  }
   0x1   :  { %s695_s17 = smov 0  }
   0x2 LB: > { %s26_s18 = sadd.s32 1, %s657_s16  ;;  %p579_p0 = scmp.ge.s32.totalorder %s661_s17, 1  ;;  %s661_s17 = sphi %s695_s17, %s14_s17   ;;  %s657_s16 = sphi %s693_s16, %s746_s16   ;;  %s653_s15 = sphi %s691_s15, %s745_s15  }
   0x3   : > { %p27_p1 = scmp.ge.s32.totalorder %s26_s18, 2  ;;  %p234_p2 = scmp.lt.s32.totalorder %s661_s17, 3 }
   0x5   : > { %s748_s18 = smov (%p27_p1, %s26_s18), 0  ;;  %p235_p3 = pnand %p579_p0, %p234_p2 }
   0x6   : > { %p292_p4 = scmp.lt.s32.totalorder (!%p235_p3), %s653_s15, 1  ;;  %v663_v0 = vmov (!%p235_p3), 0.0   ;;  %vm664_vm0 = vmmov (!%p235_p3), 0   ;;  %v353_v1 = vld [vmem:[%s742_s2] sm:$0xff] (!%p235_p3)  ;;  %v665_v2 = vmov (!%p235_p3), 0   ;;  %v354_v3 = vld [vmem:[%s742_s2 + $0x8] sm:$0xff] (!%p235_p3) }
   0x7   : > { %238 = sbr.rel (%p235_p3) target bundleno = 254 (0xfe), region = 36  ;;  %598 = vmatprep.subr.bf16.mxu0 (!%p235_p3), %v663_v0  ;;  %606 = vmatprep.mubr.msk.bf16.mxu0 (!%p235_p3), %vm664_vm0, %v663_v0  ;;  %v638_v16 = vld [vmem:[%s741_s1] sm:$0xff] (!%p235_p3)   ;;  %vm370_vm1 = vcmask (!%p235_p3), 523264   ;;  %vm419_vm2 = vcmask (!%p235_p3), 130048  }
   0x8   : > { %637 = vset.pattern.permute.xlu0 (!%p235_p3), %v665_v2 }
   0x9   : > { %357 = vperm.xlu0 (!%p235_p3), %637, %v353_v1  }
   0xd   : > { %362 = vperm.xlu0 (!%p235_p3), %637, %v354_v3  }
   0xe   : > { %s750_s15 = smov (!%p292_p4, %s653_s15), 1 }
   0xf   : > { %s590_s21 = sshll.u32 %s750_s15, 6  ;;  %s591_s29 = sshll.u32 %s750_s15, 4 }
  0x10   : > { %s299_s26 = scalar_lea.vmem %s740_s0, %s590_s21  ;;  %s323_s6 = scalar_lea.vmem %s743_s3, %s591_s29 }
  0x11   : > { %v341_v4 = vld [vmem:[%s299_s26] sm:$0xff]  ;;  %v342_v5 = vld [vmem:[%s299_s26 + $0x8] sm:$0xff]  ;;  %v343_v6 = vld [vmem:[%s299_s26 + $0x10] sm:$0xff]  ;;  %s336_s9 = scalar_lea.vmem %s744_s4, %s591_s29 }
  0x12   : > { %v349_v7 = vpack.c.bf16 %v342_v5, %v341_v4  ;;  %v344_v8 = vld [vmem:[%s299_s26 + $0x18] sm:$0xff]  ;;  %v345_v10 = vld [vmem:[%s299_s26 + $0x20] sm:$0xff]  ;;  %v346_v11 = vld [vmem:[%s299_s26 + $0x28] sm:$0xff] }
  0x13   : > { %v350_v9 = vpack.c.bf16 %v344_v8, %v343_v6  ;;  %v351_v12 = vpack.c.bf16 %v346_v11, %v345_v10  ;;  %v347_v13 = vld [vmem:[%s299_s26 + $0x30] sm:$0xff]  ;;  %v348_v14 = vld [vmem:[%s299_s26 + $0x38] sm:$0xff]  ;;  %v415_v19 = vld [vmem:[%s323_s6] sm:$0xff] }
  0x14   : > { %599 = vmatpush3.bf16.msra.mxu0 %v349_v7  ;;  %v352_v15 = vpack.c.bf16 %v348_v14, %v347_v13  ;;  %v416_v24 = vld [vmem:[%s323_s6 + $0x8] sm:$0xff] }
  0x15   : > { %600 = vmatprep.subr.bf16.mxu0 %v663_v0 }
  0x18   : > { %601 = vmatpush3.bf16.msra.mxu0 %v350_v9 }
  0x19   : > { %602 = vmatprep.subr.bf16.mxu0 %v663_v0 }
  0x1c   : > { %603 = vmatpush3.bf16.msra.mxu0 %v351_v12 }
  0x1d   : > { %604 = vmatprep.subr.bf16.mxu0 %v663_v0 }
  0x20   : > { %605 = vmatpush3.bf16.msra.mxu0 %v352_v15 }
  0x23   : > { %607 = vmatmul.mubr.msk.bf16.vlgmr.msra.gmra.mrb[0].mxu0 %vm370_vm1, %v638_v16 }
  0x88   : > { %v358_v17 = vpop.permute.xlu0 %357 }
  0x8c   : > { %v363_v22 = vpop.permute.xlu0 %362 }
  0xf6   : > { %v408_v18 = vpop.f32.mrb[0].mxu0 }
  0xf7   : > { %v409_v20 = vadd.f32 %v408_v18, %v358_v17  ;;  %v608_v21 = vpop.f32.mrb[1].mxu0 }
  0xf8   : > { %v411_v23 = vpop.f32.mrb[2].mxu0 }
  0xf9   : > { %v417_v25 = vadd.f32 %v415_v19, %v409_v20  ;;  %v412_v26 = vadd.f32 %v411_v23, %v363_v22  ;;  %v609_v27 = vpop.f32.mrb[3].mxu0 }
  0xfb   : > { %420 = vst.msk [vmem:[%s336_s9] sm:$0xff] %vm419_vm2, %v417_v25  ;;  %v418_v28 = vadd.f32 %v416_v24, %v412_v26 }
  0xfd   : > { %421 = vst.msk [vmem:[%s336_s9 + $0x8] sm:$0xff] %vm419_vm2, %v418_v28 }
  0xfe PF: > { %s14_s17 = sadd.s32 1, %s661_s17   ;;  %s745_s15 = smov %s657_s16 }
  0xff   : > { %p11_p5 = scmp.ge.s32.totalorder %s14_s17, 4   ;;  %s746_s16 = smov %s748_s18 }
 0x101   :  { %13 = sbr.rel (!%p11_p5) target bundleno = 2 (0x2), region = 75 }

// kernel: _lambda_.24
= control target key start
LH: loop header
LB: loop body
LE: loop exit
PB: predicated region body
PF: predicated region fallthrough
CT: control target
= control target key end

     0   :  { %s764_s12 = smov 0   ;;  %s766_s13 = smov 0   ;;  %s915_s0 = inlined_call_operand.vmem [shape: f32[2,16,16], index: 0, kind: input, shape index: {}]   ;;  %s916_s1 = inlined_call_operand.vmem [shape: bf16[64,16], index: 1, kind: input, shape index: {}]   ;;  %s917_s2 = inlined_call_operand.vmem [shape: f32[64,1], index: 2, kind: input, shape index: {}]   ;;  %s918_s3 = inlined_call_operand.vmem [shape: f32[2,64,16], index: 3, kind: output, shape index: {}]  }
   0x1   :  { %s768_s14 = smov 0  }
   0x2 LB: > { %s25_s15 = sadd.s32 1, %s737_s13  ;;  %p638_p0 = scmp.ge.s32.totalorder %s741_s14, 1  ;;  %s741_s14 = sphi %s768_s14, %s13_s14   ;;  %s737_s13 = sphi %s766_s13, %s920_s13   ;;  %s733_s12 = sphi %s764_s12, %s919_s12  }
   0x3   : > { %p26_p1 = scmp.ge.s32.totalorder %s25_s15, 2  ;;  %p187_p2 = scmp.lt.s32.totalorder %s741_s14, 3 }
   0x5   : > { %s922_s15 = smov (%p26_p1, %s25_s15), 0  ;;  %p188_p3 = pnand %p638_p0, %p187_p2 }
   0x6   : > { %p231_p4 = scmp.lt.s32.totalorder (!%p188_p3), %s733_s12, 1  ;;  %v699_v0 = vld [vmem:[%s916_s1] sm:$0xff] (!%p188_p3)   ;;  %vm344_vm0 = vcmask (!%p188_p3), 130048   ;;  %v700_v1 = vld [vmem:[%s916_s1 + $0x10] sm:$0xff] (!%p188_p3)   ;;  %v743_v2 = vmov (!%p188_p3), 0   ;;  %v279_v8 = vld [vmem:[%s917_s2 + $0x18] sm:$0xff] (!%p188_p3) }
   0x7   : > { %191 = sbr.rel (%p188_p3) target bundleno = 273 (0x111), region = 32  ;;  %662 = vmatprep.mubr.msk.bf16.mxu0 (!%p188_p3), %vm344_vm0, %v699_v0  ;;  %666 = vmatprep.mubr.msk.bf16.mxu1 (!%p188_p3), %vm344_vm0, %v700_v1  ;;  %v278_v3 = vld [vmem:[%s917_s2 + $0x10] sm:$0xff] (!%p188_p3)  ;;  %v276_v4 = vld [vmem:[%s917_s2] sm:$0xff] (!%p188_p3)  ;;  %v277_v9 = vld [vmem:[%s917_s2 + $0x8] sm:$0xff] (!%p188_p3) }
   0x8   : > { %698 = vset.pattern.permute.xlu1 (!%p188_p3), %v743_v2  ;;  %697 = vset.pattern.permute.xlu0 (!%p188_p3), %v743_v2  ;;  %v701_v10 = vld [vmem:[%s916_s1 + $0x8] sm:$0xff] (!%p188_p3)   ;;  %v702_v11 = vld [vmem:[%s916_s1 + $0x18] sm:$0xff] (!%p188_p3)   ;;  %v280_v13 = vld [vmem:[%s917_s2 + $0x20] sm:$0xff] (!%p188_p3) }
   0x9   : > { %296 = vperm.xlu1 (!%p188_p3), %698, %v278_v3   ;;  %286 = vperm.xlu0 (!%p188_p3), %697, %v276_v4   ;;  %v281_v12 = vld [vmem:[%s917_s2 + $0x28] sm:$0xff] (!%p188_p3)  ;;  %v283_v14 = vld [vmem:[%s917_s2 + $0x38] sm:$0xff] (!%p188_p3)  ;;  %v282_v15 = vld [vmem:[%s917_s2 + $0x30] sm:$0xff] (!%p188_p3) }
   0xd   : > { %301 = vperm.xlu1 (!%p188_p3), %698, %v279_v8   ;;  %291 = vperm.xlu0 (!%p188_p3), %697, %v277_v9  }
   0xe   : > { %s924_s12 = smov (!%p231_p4, %s733_s12), 1 }
   0xf   : > { %s653_s20 = sshll.u32 %s924_s12, 4  ;;  %s654_s21 = sshll.u32 %s924_s12, 6 }
  0x10   : > { %s238_s27 = scalar_lea.vmem %s915_s0, %s653_s20  ;;  %s880_s24 = scalar_lea.vmem %s918_s3, %s654_s21 }
  0x11   : > { %v273_v5 = vld [vmem:[%s238_s27] sm:$0xff]  ;;  %v274_v6 = vld [vmem:[%s238_s27 + $0x8] sm:$0xff]  ;;  %311 = vperm.xlu1 %698, %v281_v12   ;;  %306 = vperm.xlu0 %697, %v280_v13  }
  0x12   : > { %v275_v7 = vpack.c.bf16 %v274_v6, %v273_v5 }
  0x14   : > { %660 = vmatprep.subr.bf16.mxu0 %v275_v7  ;;  %670 = vmatprep.subr.bf16.mxu1 %v275_v7 }
  0x15   : > { %661 = vmatpush3.bf16.msra.mxu0 %v275_v7  ;;  %671 = vmatpush3.bf16.msra.mxu1 %v275_v7 }
  0x16   : > { %321 = vperm.xlu1 %698, %v283_v14   ;;  %316 = vperm.xlu0 %697, %v282_v15  }
  0x18   : > { %663 = vmatmul.mubr.msk.bf16.vlgmr.msra.gmra.mrb[0].mxu0 %vm344_vm0, %v701_v10  ;;  %667 = vmatmul.mubr.msk.bf16.vlgmr.msra.gmra.mrb[0].mxu1 %vm344_vm0, %v702_v11 }
  0x88   : > { %v297_v16 = vpop.permute.xlu1 %296  ;;  %v287_v17 = vpop.permute.xlu0 %286 }
  0x8c   : > { %v302_v18 = vpop.permute.xlu1 %301  ;;  %v292_v19 = vpop.permute.xlu0 %291 }
  0x90   : > { %v312_v20 = vpop.permute.xlu1 %311  ;;  %v307_v21 = vpop.permute.xlu0 %306 }
  0x95   : > { %v322_v22 = vpop.permute.xlu1 %321  ;;  %v317_v23 = vpop.permute.xlu0 %316 }
  0xeb   : > { %v664_v24 = vpop.f32.mrb[0].mxu0  ;;  %v668_v25 = vpop.f32.mrb[0].mxu1 }
  0xec   : > { %v828_v26 = vadd.f32 %v664_v24, %v297_v16  ;;  %v830_v27 = vadd.f32 %v668_v25, %v317_v23  ;;  %v391_v28 = vpop.f32.mrb[1].mxu0  ;;  %v407_v29 = vpop.f32.mrb[1].mxu1 }
  0xed   : > { %v832_v30 = vadd.f32 %v391_v28, %v287_v17  ;;  %v834_v31 = vadd.f32 %v407_v29, %v307_v21  ;;  %v665_v32 = vpop.f32.mrb[2].mxu0  ;;  %v669_v33 = vpop.f32.mrb[2].mxu1 }
  0xee   : > { %v424_v34 = vmul.f32 %v828_v26, %v828_v26  ;;  %v428_v35 = vmul.f32 %v830_v27, %v830_v27  ;;  %v840_v36 = vadd.f32 %v665_v32, %v302_v18  ;;  %v842_v37 = vadd.f32 %v669_v33, %v322_v22  ;;  %v394_v38 = vpop.f32.mrb[3].mxu0  ;;  %v410_v39 = vpop.f32.mrb[3].mxu1 }
  0xef   : > { %v422_v40 = vmul.f32 %v832_v30, %v832_v30  ;;  %v426_v41 = vmul.f32 %v834_v31, %v834_v31  ;;  %v848_v42 = vadd.f32 %v394_v38, %v292_v19  ;;  %v850_v43 = vadd.f32 %v410_v39, %v312_v20 }
  0xf0   : > { %v432_v44 = vmul.f32 %v424_v34, %v828_v26  ;;  %v436_v45 = vmul.f32 %v428_v35, %v830_v27  ;;  %v425_v46 = vmul.f32 %v840_v36, %v840_v36  ;;  %v429_v47 = vmul.f32 %v842_v37, %v842_v37 }
  0xf1   : > { %v430_v48 = vmul.f32 %v422_v40, %v832_v30  ;;  %v434_v49 = vmul.f32 %v426_v41, %v834_v31  ;;  %v423_v50 = vmul.f32 %v848_v42, %v848_v42  ;;  %v427_v51 = vmul.f32 %v850_v43, %v850_v43 }
  0xf2   : > { %v440_v52 = vmul.f32 0.044715, %v432_v44  ;;  %v444_v53 = vmul.f32 0.044715, %v436_v45  ;;  %v433_v54 = vmul.f32 %v425_v46, %v840_v36  ;;  %v437_v55 = vmul.f32 %v429_v47, %v842_v37 }
  0xf3   : > { %v438_v56 = vmul.f32 0.044715, %v430_v48  ;;  %v442_v57 = vmul.f32 0.044715, %v434_v49  ;;  %v431_v58 = vmul.f32 %v423_v50, %v848_v42  ;;  %v435_v59 = vmul.f32 %v427_v51, %v850_v43 }
  0xf4   : > { %v448_v60 = vadd.f32 %v440_v52, %v828_v26  ;;  %v452_v61 = vadd.f32 %v444_v53, %v830_v27  ;;  %v441_v62 = vmul.f32 0.044715, %v433_v54  ;;  %v445_v63 = vmul.f32 0.044715, %v437_v55 }
  0xf5   : > { %v446_v0 = vadd.f32 %v438_v56, %v832_v30  ;;  %v450_v1 = vadd.f32 %v442_v57, %v834_v31  ;;  %v439_v2 = vmul.f32 0.044715, %v431_v58  ;;  %v443_v3 = vmul.f32 0.044715, %v435_v59 }
  0xf6   : > { %v456_v4 = vmul.f32 0.7978846, %v448_v60  ;;  %v460_v5 = vmul.f32 0.7978846, %v452_v61  ;;  %v449_v6 = vadd.f32 %v441_v62, %v840_v36  ;;  %v453_v7 = vadd.f32 %v445_v63, %v842_v37 }
  0xf7   : > { %v454_v8 = vmul.f32 0.7978846, %v446_v0  ;;  %v458_v9 = vmul.f32 0.7978846, %v450_v1  ;;  %v447_v10 = vadd.f32 %v439_v2, %v848_v42  ;;  %v451_v11 = vadd.f32 %v443_v3, %v850_v43 }
  0xf8   : > { %703 = vtanh.f32 %v456_v4  ;;  %v457_v12 = vmul.f32 0.7978846, %v449_v6  ;;  %v461_v13 = vmul.f32 0.7978846, %v453_v7 }
  0xf9   : > { %705 = vtanh.f32 %v460_v5  ;;  %v455_v14 = vmul.f32 0.7978846, %v447_v10  ;;  %v459_v15 = vmul.f32 0.7978846, %v451_v11 }
  0xfa   : > { %707 = vtanh.f32 %v454_v8 }
  0xfb   : > { %709 = vtanh.f32 %v458_v9 }
  0xfc   : > { %711 = vtanh.f32 %v457_v12 }
  0xfd   : > { %713 = vtanh.f32 %v461_v13 }
  0xfe   : > { %715 = vtanh.f32 %v455_v14 }
  0xff   : > { %717 = vtanh.f32 %v459_v15 }
 0x102   : > { %v704_v16 = vpop.eup %703 }
 0x103   : > { %v706_v17 = vpop.eup %705  ;;  %v472_v18 = vadd.f32 1.0, %v704_v16 }
 0x104   : > { %v708_v19 = vpop.eup %707  ;;  %v476_v20 = vadd.f32 1.0, %v706_v17 }
 0x105   : > { %v710_v21 = vpop.eup %709  ;;  %v480_v22 = vmul.f32 0.5, %v472_v18  ;;  %v470_v23 = vadd.f32 1.0, %v708_v19 }
 0x106   : > { %v712_v24 = vpop.eup %711  ;;  %v484_v25 = vmul.f32 0.5, %v476_v20  ;;  %v474_v28 = vadd.f32 1.0, %v710_v21 }
 0x107   : > { %v714_v29 = vpop.eup %713  ;;  %v488_v32 = vmul.f32 %v480_v22, %v828_v26  ;;  %v478_v33 = vmul.f32 0.5, %v470_v23  ;;  %v473_v34 = vadd.f32 1.0, %v712_v24 }
 0x108   : > { %v716_v35 = vpop.eup %715  ;;  %v492_v38 = vmul.f32 %v484_v25, %v830_v27  ;;  %v482_v39 = vmul.f32 0.5, %v474_v28  ;;  %v477_v40 = vadd.f32 1.0, %v714_v29 }
 0x109   : > { %v718_v41 = vpop.eup %717  ;;  %496 = vst.msk [vmem:[%s880_s24 + $0x10] sm:$0xff] %vm344_vm0, %v488_v32  ;;  %v486_v44 = vmul.f32 %v478_v33, %v832_v30  ;;  %v481_v45 = vmul.f32 0.5, %v473_v34  ;;  %v471_v46 = vadd.f32 1.0, %v716_v35 }
 0x10a   : > { %500 = vst.msk [vmem:[%s880_s24 + $0x30] sm:$0xff] %vm344_vm0, %v492_v38  ;;  %v490_v26 = vmul.f32 %v482_v39, %v834_v31  ;;  %v485_v47 = vmul.f32 0.5, %v477_v40  ;;  %v475_v48 = vadd.f32 1.0, %v718_v41 }
 0x10b   : > { %494 = vst.msk [vmem:[%s880_s24] sm:$0xff] %vm344_vm0, %v486_v44  ;;  %v489_v27 = vmul.f32 %v481_v45, %v840_v36  ;;  %v479_v49 = vmul.f32 0.5, %v471_v46 }
 0x10c   : > { %498 = vst.msk [vmem:[%s880_s24 + $0x20] sm:$0xff] %vm344_vm0, %v490_v26  ;;  %v493_v50 = vmul.f32 %v485_v47, %v842_v37  ;;  %v483_v30 = vmul.f32 0.5, %v475_v48 }
 0x10d   : > { %497 = vst.msk [vmem:[%s880_s24 + $0x18] sm:$0xff] %vm344_vm0, %v489_v27  ;;  %v487_v51 = vmul.f32 %v479_v49, %v848_v42 }
 0x10e   : > { %501 = vst.msk [vmem:[%s880_s24 + $0x38] sm:$0xff] %vm344_vm0, %v493_v50  ;;  %v491_v31 = vmul.f32 %v483_v30, %v850_v43 }
 0x10f   : > { %495 = vst.msk [vmem:[%s880_s24 + $0x8] sm:$0xff] %vm344_vm0, %v487_v51 }
 0x110   : > { %499 = vst.msk [vmem:[%s880_s24 + $0x28] sm:$0xff] %vm344_vm0, %v491_v31 }
 0x111 PF: > { %s13_s14 = sadd.s32 1, %s741_s14   ;;  %s919_s12 = smov %s737_s13 }
 0x112   : > { %p10_p5 = scmp.ge.s32.totalorder %s13_s14, 4   ;;  %s920_s13 = smov %s922_s15 }
 0x114   :  { %12 = sbr.rel (!%p10_p5) target bundleno = 2 (0x2), region = 68 }

// kernel: _lambda_.27
= control target key start
LH: loop header
LB: loop body
LE: loop exit
PB: predicated region body
PF: predicated region fallthrough
CT: control target
= control target key end

     0   :  { %v158_v2 = vmov 0.0|0.0   ;;  %vm159_vm0 = vmmov 0   ;;  %v160_v4 = vmov 0.0   ;;  %s206_s0 = inlined_call_operand.vmem [shape: f32[2,16], index: 0, kind: input, shape index: {}]   ;;  %s207_s1 = inlined_call_operand.vmem [shape: f32[16,10], index: 1, kind: input, shape index: {}]   ;;  %s208_s2 = inlined_call_operand.vmem [shape: f32[1,10], index: 2, kind: input, shape index: {}]   ;;  %s209_s3 = inlined_call_operand.hbm [shape: f32[2,10], index: 3, kind: output, shape index: {}]  }
   0x1   :  { %v16_v0 = vld [vmem:[%s207_s1] sm:$0xff]  ;;  %v17_v1 = vld [vmem:[%s207_s1 + $0x8] sm:$0xff]  ;;  %127 = vmatprep.subr.bf16.mxu0 %v158_v2  ;;  %124 = vmatprep.mubr.msk.f32.mxu0 %vm159_vm0, %v160_v4 }
   0x2   :  { %v128_v3 = vpack.c.bf16 %v17_v1, %v16_v0 }
   0x3   :  { %8 = vsyncpa [#allocation3], 0  ;;  %v15_v5 = vld [vmem:[%s206_s0] sm:$0x3]  ;;  %vm25_vm1 = vcmask 130048   ;;  %s161_s20 = smov [#allocation2]  }
   0x4   :  { %129 = vmatpush3.bf16.msra.mxu0 %v128_v3  ;;  %v115_v6 = vld [vmem:[%s208_s2] ss:$0 sm:$0xff]  ;;  %s107_s1 = sshll.u32 %s161_s20, 4  ;;  %vm99_vm2 = vcmask 74752   ;;  %s108_s1 = int_to_ptr.vmem [resolvable:$true] %s107_s1 }
   0x5   :  { %s134_s21 = scalar_lea.vmem %s108_s1, 32  ;;  %p139_p1 = scmp.lt.s32.totalorder %s108_s1, %s108_s1 }
   0x6   :  { %p135_p0 = scmp.ne.s32.totalorder %s108_s1, %s134_s21  ;;  %p140_p2 = scmp.lt.s32.totalorder %s134_s21, %s134_s21 }
   0x7   :  { %125 = vmatmul.mubr.msk.f32.vlgmr.msra.gmra.mrb[0].mxu0 %vm25_vm1, %v15_v5 }
   0x8   :  { %p141_p3 = por %p140_p2, %p139_p1 }
   0xa   :  { %p142_p4 = pnand %p141_p3, %p135_p0 }
  0xda   :  { %v95_v7 = vpop.f32.mrb[0].mxu0 }
  0xdb   :  { %v96_v8 = vadd.f32 %v115_v6, %v95_v7  ;;  %v126_v9 = vpop.f32.mrb[1].mxu0 }
  0xdd   :  { %100 = vst.msk [vmem:[#allocation2] sm:$0x3] %vm99_vm2, %v96_v8 }
  0xde   :  { %145 = shalt.err (!%p142_p4)
}
  0xdf   :  { %s146_s23 = scalar_lea.hbm %s209_s3, 32 }
  0xe0   :  { %p147_p5 = scmp.ne.s32.totalorder %s209_s3, %s146_s23  ;;  %p150_p6 = scmp.lt.u32.totalorder %s146_s23, %s209_s3 }
  0xe2   :  { %p152_p7 = pnand %p150_p6, %p147_p5 }
  0xe4   :  { %155 = shalt.err (!%p152_p7)
}
  0xe5   :  { %110 = dma.vmem_to_hbm [thread:$0]  %s108_s1, 32, %s209_s3, [#allocation3]  }
  0xe6   :  { %156 = dma.done.wait [#allocation3], 32  }
  0xe7   :  { %157 = vsyncadd [#allocation3], 4294967264 }
  0xe8   :  { %114 = vsyncpa [#allocation3], 1 }

</bundles_post_ra>
